<compile_context>
chip_gen: v7x
topology: tpu7x:2x2x1
jax: 0.10.0
libtpu: 0.0.40
codegen_flags: <defaults>
</compile_context>

<pallas_src>
import jax
import jax.numpy as jnp
from jax.experimental import pallas as pl
from jax.experimental.pallas import tpu as pltpu

HIDDEN = 1000       # module's hidden width
HIDDEN_PAD = 1024   # padded to 8*128 lanes for clean vreg / MXU tiling


def discateg_kernel(x_ref, w0_ref, w1_ref, p_ref, o_ref):
    # p_ref rows: 0 = b0, 1 = b1, 2 = w2 (as a row), 3 = b2 (lane 0).
    # d0: (TB, n_labels) @ (n_labels, Hp) -- bf16 weights, f32 MXU accumulation.
    h = jnp.dot(x_ref[...].astype(jnp.bfloat16), w0_ref[...],
                preferred_element_type=jnp.float32)
    h = jnp.maximum(h + p_ref[0:1, :], 0.0)                    # +b0, relu0
    # ds1: (TB, Hp) @ (Hp, Hp)
    h = jnp.dot(h.astype(jnp.bfloat16), w1_ref[...],
                preferred_element_type=jnp.float32)
    h = jnp.maximum(h + p_ref[1:2, :], 0.0)                    # +b1, relu1
    # ds2 (N=1): VPU multiply + lane (XLU) reduction against the w2 row.
    logits = jnp.sum(h * p_ref[2:3, :], axis=-1, keepdims=True) + p_ref[3:4, 0:1]
    o_ref[...] = jax.nn.sigmoid(logits)                        # sigmoid


def discateg_forward(x, w0, w1, param_pack, *, batch_tile=512,
                     megacore_min_batch=8192):
    B, n_labels = x.shape
    TB = B if B <= batch_tile else batch_tile
    grid = (pl.cdiv(B, TB),)

    # Weights / packed params: full-array blocks, constant index_map (DMA'd
    # once, VMEM-resident across batch tiles), single-buffered (they never
    # change, so a second pipeline buffer is pure VMEM waste).
    resident = lambda shape: pl.BlockSpec(
        shape, lambda i: (0, 0), pipeline_mode=pl.Buffered(1))

    nbytes = lambda a: a.size * a.dtype.itemsize
    cost = pl.CostEstimate(
        flops=2 * B * (n_labels * HIDDEN + HIDDEN * HIDDEN + HIDDEN),
        transcendentals=B,  # sigmoid
        bytes_accessed=(nbytes(x) + nbytes(w0) + nbytes(w1)
                        + nbytes(param_pack) + B * 4),
    )

    # Megacore gating: only shard the batch axis across TensorCores (v7x) when
    # B is large enough that per-core compute beats the duplicated w1 DMA into
    # each core's private VMEM.
    dims = ("parallel",) if B >= megacore_min_batch else ("arbitrary",)

    return pl.pallas_call(
        discateg_kernel,
        out_shape=jax.ShapeDtypeStruct((B, 1), jnp.float32),
        grid=grid,
        in_specs=[
            pl.BlockSpec((TB, n_labels), lambda i: (i, 0)),  # x: batch-tiled
            resident(w0.shape),          # d0 weight  (n_labels, Hp) bf16
            resident(w1.shape),          # ds1 weight (Hp, Hp) bf16
            resident(param_pack.shape),  # [b0; b1; w2 row; b2] (4, Hp) f32
        ],
        out_specs=pl.BlockSpec((TB, 1), lambda i: (i, 0)),
        compiler_params=pltpu.CompilerParams(
            dimension_semantics=dims,
            vmem_limit_bytes=32 << 20,
        ),
        cost_estimate=cost,
    )(x, w0, w1, param_pack)


def init_params(key, n_labels, hidden=HIDDEN, hidden_pad=HIDDEN_PAD):
    """Deterministic synthetic init (PyTorch-Linear-style uniform bounds).

    Returns (packed_params_for_kernel, raw_f32_params_for_reference).
    Packed params: hidden dim zero-padded to `hidden_pad`, w0/w1 in bf16,
    and the four small f32 params packed into one (4, hidden_pad) array
    (rows: b0, b1, w2-row, b2).
    """
    ks = jax.random.split(key, 6)

    def lin(kw, kb, fan_in, fan_out):
        bound = 1.0 / jnp.sqrt(fan_in)
        w = jax.random.uniform(kw, (fan_in, fan_out), jnp.float32, -bound, bound)
        b = jax.random.uniform(kb, (1, fan_out), jnp.float32, -bound, bound)
        return w, b

    w0, b0 = lin(ks[0], ks[1], n_labels, hidden)   # d0
    w1, b1 = lin(ks[2], ks[3], hidden, hidden)     # ds1
    w2, b2 = lin(ks[4], ks[5], hidden, 1)          # ds2

    p = hidden_pad - hidden
    # Zero padding is exact: padded hidden units stay 0 through bias+ReLU and
    # their w1 rows / w2 entries are 0, so they never contribute.
    w0p = jnp.pad(w0, ((0, 0), (0, p))).astype(jnp.bfloat16)
    w1p = jnp.pad(w1, ((0, p), (0, p))).astype(jnp.bfloat16)

    pack = jnp.zeros((4, hidden_pad), jnp.float32)
    pack = pack.at[0, :hidden].set(b0[0])        # b0
    pack = pack.at[1, :hidden].set(b1[0])        # b1
    pack = pack.at[2, :hidden].set(w2[:, 0])     # w2 as a row
    pack = pack.at[3, 0].set(b2[0, 0])           # b2 scalar in lane 0
    return (w0p, w1p, pack), (w0, b0, w1, b1, w2, b2)


def _ref_bf16(x, packed):
    """Pure-JAX reference with the SAME bf16-rounded weights / cast points."""
    w0p, w1p, pack = packed
    h = jnp.dot(x.astype(jnp.bfloat16), w0p, preferred_element_type=jnp.float32)
    h = jnp.maximum(h + pack[0:1, :], 0.0)
    h = jnp.dot(h.astype(jnp.bfloat16), w1p, preferred_element_type=jnp.float32)
    h = jnp.maximum(h + pack[1:2, :], 0.0)
    return jax.nn.sigmoid(
        jnp.sum(h * pack[2:3, :], axis=-1, keepdims=True) + pack[3:4, 0:1])


if __name__ == "__main__":
    # Config-like constants (synthetic): n_labels is the forward's input width.
    n_labels = 10
    z_dim = 32  # only used by ds0, which forward() never calls
    batch = 8

    key = jax.random.PRNGKey(0)
    kx, kx2, kp = jax.random.split(key, 3)
    x = jax.random.normal(kx, (batch, n_labels), jnp.float32)
    packed, raw = init_params(kp, n_labels)

    out = discateg_forward(x, *packed)
    out = jax.block_until_ready(out)
    assert out.shape == (batch, 1)

    # Reference 1: bf16-rounded weights / same cast points (tight tolerance,
    # checks the kernel plumbing).
    ref = _ref_bf16(x, packed)
    assert jnp.allclose(out, ref, atol=1e-4, rtol=1e-4)

    # Reference 2: original f32, unpadded module math (loose tol for bf16 weights).
    w0, b0, w1, b1, w2, b2 = raw
    h32 = jnp.maximum(x @ w0 + b0, 0.0)
    h32 = jnp.maximum(h32 @ w1 + b1, 0.0)
    ref32 = jax.nn.sigmoid(h32 @ w2 + b2)
    assert jnp.allclose(out, ref32, atol=3e-2)

    # Multi-tile path: B not a multiple of batch_tile (exercises the batch grid
    # and the masked partial last tile).
    batch2 = 300
    x2 = jax.random.normal(kx2, (batch2, n_labels), jnp.float32)
    out2 = jax.block_until_ready(discateg_forward(x2, *packed, batch_tile=128))
    assert out2.shape == (batch2, 1)
    assert jnp.allclose(out2, _ref_bf16(x2, packed), atol=1e-4, rtol=1e-4)

    print("KERNEL_OK")
</pallas_src>

<mosaic_0001>
module attributes {stable_mosaic.version = 11 : i64} {
  func.func @discateg_kernel(%arg0: i32, %arg1: memref<8x10xf32, #tpu.memory_space<vmem>>, %arg2: memref<10x1024xbf16, #tpu.memory_space<vmem>>, %arg3: memref<1024x1024xbf16, #tpu.memory_space<vmem>>, %arg4: memref<4x1024xf32, #tpu.memory_space<vmem>>, %arg5: memref<8x1xf32, #tpu.memory_space<vmem>>) attributes {dimension_semantics = [#tpu.dimension_semantics<arbitrary>], iteration_bounds = array<i64: 1>, scalar_prefetch = 0 : i64, scratch_operands = 0 : i64, tpu.core_type = #tpu.core_type<tc>, window_params = [{transform_indices = @transform_0, window_bounds = array<i64: 8, 10>}, {pipeline_mode = #tpu.pipeline_mode<synchronous>, transform_indices = @transform_1, window_bounds = array<i64: 10, 1024>}, {pipeline_mode = #tpu.pipeline_mode<synchronous>, transform_indices = @transform_2, window_bounds = array<i64: 1024, 1024>}, {pipeline_mode = #tpu.pipeline_mode<synchronous>, transform_indices = @transform_3, window_bounds = array<i64: 4, 1024>}, {transform_indices = @transform_4, window_bounds = array<i64: 8, 1>}]} {
    %c0 = arith.constant 0 : index
    %c0_0 = arith.constant 0 : index
    %0 = vector.load %arg1[%c0, %c0_0] : memref<8x10xf32, #tpu.memory_space<vmem>>, vector<8x10xf32>
    %1 = arith.truncf %0 : vector<8x10xf32> to vector<8x10xbf16>
    %c0_1 = arith.constant 0 : index
    %c0_2 = arith.constant 0 : index
    %2 = vector.load %arg2[%c0_1, %c0_2] : memref<10x1024xbf16, #tpu.memory_space<vmem>>, vector<10x1024xbf16>
    %cst = arith.constant dense<0.000000e+00> : vector<8x1024xf32>
    %3 = tpu.matmul %1, %2, %cst {dimension_numbers = #tpu.dot_dimension_numbers<[1], [0], [0], [1], [0, 0, 1, 1], [], []>} : vector<8x10xbf16>, vector<10x1024xbf16>, vector<8x1024xf32> -> vector<8x1024xf32>
    %c0_3 = arith.constant 0 : index
    %c0_4 = arith.constant 0 : index
    %4 = vector.load %arg4[%c0_3, %c0_4] : memref<4x1024xf32, #tpu.memory_space<vmem>>, vector<1x1024xf32>
    %5 = vector.broadcast %4 : vector<1x1024xf32> to vector<8x1024xf32>
    %6 = arith.addf %3, %5 : vector<8x1024xf32>
    %cst_5 = arith.constant 0.000000e+00 : f32
    %7 = vector.broadcast %cst_5 : f32 to vector<8x1024xf32>
    %8 = arith.maximumf %6, %7 : vector<8x1024xf32>
    %9 = arith.truncf %8 : vector<8x1024xf32> to vector<8x1024xbf16>
    %c0_6 = arith.constant 0 : index
    %c0_7 = arith.constant 0 : index
    %10 = vector.load %arg3[%c0_6, %c0_7] : memref<1024x1024xbf16, #tpu.memory_space<vmem>>, vector<1024x1024xbf16>
    %cst_8 = arith.constant dense<0.000000e+00> : vector<8x1024xf32>
    %11 = tpu.matmul %9, %10, %cst_8 {dimension_numbers = #tpu.dot_dimension_numbers<[1], [0], [0], [1], [0, 0, 1, 1], [], []>} : vector<8x1024xbf16>, vector<1024x1024xbf16>, vector<8x1024xf32> -> vector<8x1024xf32>
    %c1 = arith.constant 1 : index
    %c0_9 = arith.constant 0 : index
    %12 = vector.load %arg4[%c1, %c0_9] : memref<4x1024xf32, #tpu.memory_space<vmem>>, vector<1x1024xf32>
    %13 = vector.broadcast %12 : vector<1x1024xf32> to vector<8x1024xf32>
    %14 = arith.addf %11, %13 : vector<8x1024xf32>
    %cst_10 = arith.constant 0.000000e+00 : f32
    %15 = vector.broadcast %cst_10 : f32 to vector<8x1024xf32>
    %16 = arith.maximumf %14, %15 : vector<8x1024xf32>
    %c2 = arith.constant 2 : index
    %c0_11 = arith.constant 0 : index
    %17 = vector.load %arg4[%c2, %c0_11] : memref<4x1024xf32, #tpu.memory_space<vmem>>, vector<1x1024xf32>
    %18 = vector.broadcast %17 : vector<1x1024xf32> to vector<8x1024xf32>
    %19 = arith.mulf %16, %18 : vector<8x1024xf32>
    %cst_12 = arith.constant dense<0.000000e+00> : vector<8xf32>
    %20 = vector.multi_reduction <add>, %19, %cst_12 [1] : vector<8x1024xf32> to vector<8xf32>
    %21 = vector.shape_cast %20 : vector<8xf32> to vector<8x1xf32>
    %c3 = arith.constant 3 : index
    %c0_13 = arith.constant 0 : index
    %22 = vector.load %arg4[%c3, %c0_13] : memref<4x1024xf32, #tpu.memory_space<vmem>>, vector<1x1xf32>
    %23 = vector.broadcast %22 : vector<1x1xf32> to vector<8x1xf32>
    %24 = arith.addf %21, %23 : vector<8x1xf32>
    %25 = arith.negf %24 : vector<8x1xf32>
    %26 = math.exp %25 : vector<8x1xf32>
    %cst_14 = arith.constant 1.000000e+00 : f32
    %27 = vector.broadcast %cst_14 : f32 to vector<8x1xf32>
    %28 = arith.addf %27, %26 : vector<8x1xf32>
    %29 = arith.divf %27, %28 : vector<8x1xf32>
    %c0_15 = arith.constant 0 : index
    %c0_16 = arith.constant 0 : index
    %30 = vector.load %arg5[%c0_15, %c0_16] : memref<8x1xf32, #tpu.memory_space<vmem>>, vector<8x1xf32>
    tpu.vector_store %arg5[%c0_15, %c0_16], %29 {strides = array<i32>} : memref<8x1xf32, #tpu.memory_space<vmem>>, vector<8x1xf32>,
    return
  }
  func.func @transform_0(%arg0: i32) -> (i32, i32) {
    %c0_i32 = arith.constant 0 : i32
    %c0_i32_0 = arith.constant 0 : i32
    return %arg0, %c0_i32 : i32, i32
  }
  func.func @transform_1(%arg0: i32) -> (i32, i32) {
    %c0_i32 = arith.constant 0 : i32
    %c0_i32_0 = arith.constant 0 : i32
    %c0_i32_1 = arith.constant 0 : i32
    return %c0_i32, %c0_i32_0 : i32, i32
  }
  func.func @transform_2(%arg0: i32) -> (i32, i32) {
    %c0_i32 = arith.constant 0 : i32
    %c0_i32_0 = arith.constant 0 : i32
    %c0_i32_1 = arith.constant 0 : i32
    return %c0_i32, %c0_i32_0 : i32, i32
  }
  func.func @transform_3(%arg0: i32) -> (i32, i32) {
    %c0_i32 = arith.constant 0 : i32
    %c0_i32_0 = arith.constant 0 : i32
    %c0_i32_1 = arith.constant 0 : i32
    return %c0_i32, %c0_i32_0 : i32, i32
  }
  func.func @transform_4(%arg0: i32) -> (i32, i32) {
    %c0_i32 = arith.constant 0 : i32
    %c0_i32_0 = arith.constant 0 : i32
    return %arg0, %c0_i32 : i32, i32
  }
}

</mosaic_0001>

<bundles_post_ra>
// kernel: tpu_custom_call.1
= control target key start
LH: loop header
LB: loop body
LE: loop exit
PB: predicated region body
PF: predicated region fallthrough
CT: control target
= control target key end

     0   :  { %9 = vsyncpa [#allocation3], 0  ;;  %s5160_s0 = inlined_call_operand.hbm [shape: f32[8,10], index: 0, kind: input, shape index: {}]   ;;  %s5161_s1 = inlined_call_operand.hbm [shape: bf16[10,1024], index: 1, kind: input, shape index: {}]   ;;  %s5162_s2 = inlined_call_operand.hbm [shape: bf16[1024,1024], index: 2, kind: input, shape index: {}]   ;;  %s5163_s3 = inlined_call_operand.hbm [shape: f32[4,1024], index: 3, kind: input, shape index: {}]   ;;  %s5164_s4 = inlined_call_operand.vmem [shape: f32[8,1], index: 4, kind: output, shape index: {}]  }
   0x1   :  { %10 = vsyncpa [#allocation5], 0 }
   0x2   :  { %11 = vsyncpa [#allocation8], 0  ;;  %s4914_s15 = smov [#allocation4]   ;;  %s4820_s19 = scalar_lea.hbm %s5161_s1, 1024 }
   0x3   :  { %s27_s16 = sshll.u32 %s4914_s15, 4  ;;  %p4821_p0 = scmp.ne.s32.totalorder %s5161_s1, %s4820_s19  ;;  %s28_s16 = int_to_ptr.vmem [resolvable:$true] %s27_s16 }
   0x4   :  { %p4824_p1 = scmp.lt.u32.totalorder %s4820_s19, %s5161_s1 }
   0x6   :  { %p4826_p2 = pnand %p4824_p1, %p4821_p0 }
   0x8   :  { %4829 = shalt.err (!%p4826_p2)
}
   0x9   :  { %s4830_s24 = scalar_lea.vmem %s28_s16, 1024  ;;  %p4835_p4 = scmp.lt.s32.totalorder %s28_s16, %s28_s16 }
   0xa   :  { %p4831_p3 = scmp.ne.s32.totalorder %s28_s16, %s4830_s24  ;;  %p4836_p5 = scmp.lt.s32.totalorder %s4830_s24, %s4830_s24 }
   0xc   :  { %p4837_p6 = por %p4836_p5, %p4835_p4 }
   0xe   :  { %p4838_p7 = pnand %p4837_p6, %p4831_p3 }
  0x10   :  { %4841 = shalt.err (!%p4838_p7)
}
  0x11   :  { %s4915_s25 = smov 512   ;;  %s4916_s26 = smov 32  }
  0x12   :  { %33 = dma.hbm_to_vmem [thread:$0]  %s5161_s1, 1024, %s28_s16, [#allocation5], %s4915_s25, %s4915_s25, %s4916_s26  }
  0x13   :  { %s4917_s29 = smov [#allocation2]   ;;  %s4918_s5 = smov [#allocation6]  }
  0x14   :  { %s18_s30 = sshll.u32 %s4917_s29, 4  ;;  %s39_s6 = sshll.u32 %s4918_s5, 4  ;;  %s19_s30 = int_to_ptr.vmem [resolvable:$true] %s18_s30  ;;  %s40_s6 = int_to_ptr.vmem [resolvable:$true] %s39_s6 }
  0x15   :  { %s4842_s9 = scalar_lea.hbm %s5160_s0, 128 }
  0x16   :  { %p4843_p8 = scmp.ne.s32.totalorder %s5160_s0, %s4842_s9  ;;  %p4846_p9 = scmp.lt.u32.totalorder %s4842_s9, %s5160_s0 }
  0x18   :  { %p4848_p10 = pnand %p4846_p9, %p4843_p8 }
  0x1a   :  { %4851 = shalt.err (!%p4848_p10)
}
  0x1b   :  { %s4852_s1 = scalar_lea.vmem %s19_s30, 128  ;;  %p4857_p12 = scmp.lt.s32.totalorder %s19_s30, %s19_s30 }
  0x1c   :  { %p4853_p11 = scmp.ne.s32.totalorder %s19_s30, %s4852_s1  ;;  %p4858_p13 = scmp.lt.s32.totalorder %s4852_s1, %s4852_s1 }
  0x1e   :  { %p4859_p0 = por %p4858_p13, %p4857_p12 }
  0x20   :  { %p4860_p1 = pnand %p4859_p0, %p4853_p11 }
  0x22   :  { %4863 = shalt.err (!%p4860_p1)
}
  0x23   :  { %21 = dma.hbm_to_vmem [thread:$0]  %s5160_s0, 128, %s19_s30, [#allocation3]  }
  0x24   :  { %s4864_s18 = scalar_lea.hbm %s5162_s2, 65536 }
  0x25   :  { %p4865_p2 = scmp.ne.s32.totalorder %s5162_s2, %s4864_s18  ;;  %p4868_p3 = scmp.lt.u32.totalorder %s4864_s18, %s5162_s2 }
  0x27   :  { %p4870_p4 = pnand %p4868_p3, %p4865_p2 }
  0x29   :  { %4873 = shalt.err (!%p4870_p4)
}
  0x2a   :  { %s4874_s23 = scalar_lea.vmem %s40_s6, 65536  ;;  %p4879_p6 = scmp.lt.s32.totalorder %s40_s6, %s40_s6 }
  0x2b   :  { %p4875_p5 = scmp.ne.s32.totalorder %s40_s6, %s4874_s23  ;;  %p4880_p7 = scmp.lt.s32.totalorder %s4874_s23, %s4874_s23 }
  0x2d   :  { %p4881_p8 = por %p4880_p7, %p4879_p6 }
  0x2f   :  { %p4882_p9 = pnand %p4881_p8, %p4875_p5 }
  0x31   :  { %4885 = shalt.err (!%p4882_p9)
}
  0x32   :  { %45 = dma.hbm_to_vmem [thread:$0]  %s5162_s2, 65536, %s40_s6, [#allocation5], %s4915_s25, %s4915_s25, %s4916_s26  }
  0x33   :  { %s4919_s27 = smov [#allocation7]   ;;  %s4886_s5 = scalar_lea.hbm %s5163_s3, 512 }
  0x34   :  { %s52_s28 = sshll.u32 %s4919_s27, 4  ;;  %p4887_p10 = scmp.ne.s32.totalorder %s5163_s3, %s4886_s5  ;;  %s53_s28 = int_to_ptr.vmem [resolvable:$true] %s52_s28 }
  0x35   :  { %p4890_p11 = scmp.lt.u32.totalorder %s4886_s5, %s5163_s3 }
  0x37   :  { %p4892_p12 = pnand %p4890_p11, %p4887_p10 }
  0x39   :  { %4895 = shalt.err (!%p4892_p12)
}
  0x3a   :  { %s4896_s11 = scalar_lea.vmem %s53_s28, 512  ;;  %p4901_p0 = scmp.lt.s32.totalorder %s53_s28, %s53_s28 }
  0x3b   :  { %p4897_p13 = scmp.ne.s32.totalorder %s53_s28, %s4896_s11  ;;  %p4902_p1 = scmp.lt.s32.totalorder %s4896_s11, %s4896_s11 }
  0x3d   :  { %p4903_p2 = por %p4902_p1, %p4901_p0 }
  0x3f   :  { %p4904_p3 = pnand %p4903_p2, %p4897_p13 }
  0x41   :  { %4907 = shalt.err (!%p4904_p3)
}
  0x42   :  { %55 = dma.hbm_to_vmem [thread:$0]  %s5163_s3, 512, %s53_s28, [#allocation8]  }
  0x43   :  { %4908 = dma.done.wait [#allocation3], 128  }
  0x44   :  { %4909 = vsyncadd [#allocation3], 4294967168 }
  0x45   :  { %4910 = dma.done.wait [#allocation5], 66560  }
  0x46   :  { %4911 = vsyncadd [#allocation5], 4294900736 }
  0x47   :  { %4912 = dma.done.wait [#allocation8], 512  }
  0x48   :  { %4913 = vsyncadd [#allocation8], 4294966784  ;;  %v4920_v0 = vmov 0   ;;  %v71_v1 = vld [vmem:[#allocation4] sm:$0xff]  ;;  %vm157_vm0 = vcmask 1044480   ;;  %v69_v3 = vld [vmem:[#allocation2] sm:$0xff] }
  0x49   :  { %214 = vmatprep.mubr.bf16.mxu0 %v4920_v0  ;;  %255 = vmatprep.mubr.bf16.mxu1 %v4920_v0  ;;  %v75_v2 = vld [vmem:[#allocation4 + $0x20] sm:$0x11]  ;;  %v72_v6 = vld [vmem:[#allocation4 + $0x8] sm:$0xff]  ;;  %v73_v8 = vld [vmem:[#allocation4 + $0x10] sm:$0xff]  ;;  %v70_v9 = vpack.c.bf16 %v69_v3, %v69_v3  ;;  %vm153_vm1 = vcmask 80896   ;;  %vm4213_vm2 = vcmask 7168  }
  0x4a   :  { %v4223_v4 = vcombine.high %v71_v1, %v75_v2  ;;  %v4222_v5 = vcombine.low %v71_v1, %v75_v2  ;;  %v76_v7 = vld [vmem:[#allocation4 + $0x28] sm:$0x11]  ;;  %v77_v12 = vld [vmem:[#allocation4 + $0x30] sm:$0x11]  ;;  %v74_v13 = vld [vmem:[#allocation4 + $0x18] sm:$0xff] }
  0x4b   :  { %v4225_v10 = vcombine.high %v72_v6, %v76_v7  ;;  %v4224_v11 = vcombine.low %v72_v6, %v76_v7  ;;  %v78_v14 = vld [vmem:[#allocation4 + $0x38] sm:$0x11]  ;;  %v4227_v16 = vcombine.high %v73_v8, %v77_v12  ;;  %v4226_v17 = vcombine.low %v73_v8, %v77_v12  ;;  %v362_v19 = vld [vmem:[#allocation6] sm:$0xff]  ;;  %v363_v23 = vld [vmem:[#allocation6 + $0x8] sm:$0xff] }
  0x4c   :  { %4230 = vmatprep.subr.msk.bf16.mxu0 %vm157_vm0, %v4223_v4  ;;  %v159_v15 = vsel %vm157_vm0, %v4222_v5, 0  ;;  %v4229_v18 = vcombine.high %v74_v13, %v78_v14  ;;  %v366_v20 = vld [vmem:[#allocation6 + $0x20] sm:$0xff]  ;;  %v4228_v22 = vcombine.low %v74_v13, %v78_v14  ;;  %v367_v24 = vld [vmem:[#allocation6 + $0x28] sm:$0xff] }
  0x4d   :  { %183 = vmatpush1.bf16.msra.mxu0 %v159_v15  ;;  %4232 = vmatprep.subr.msk.bf16.mxu1 %vm157_vm0, %v4225_v10  ;;  %v165_v21 = vsel %vm157_vm0, %v4224_v11, 0  ;;  %v171_v25 = vsel %vm157_vm0, %v4226_v17, 0  ;;  %v4239_v27 = vcombine.high %v362_v19, %v366_v20  ;;  %v4241_v28 = vcombine.high %v363_v23, %v367_v24  ;;  %v370_v29 = vld [vmem:[#allocation6 + $0x40] sm:$0xff]  ;;  %v371_v31 = vld [vmem:[#allocation6 + $0x48] sm:$0xff] }
  0x4e   :  { %224 = vmatpush1.bf16.msra.mxu1 %v165_v21  ;;  %4234 = vmatprep.subr.msk.bf16.mxu0 %vm157_vm0, %v4227_v16  ;;  %v177_v26 = vsel %vm157_vm0, %v4228_v22, 0  ;;  %v374_v30 = vld [vmem:[#allocation6 + $0x60] sm:$0xff]  ;;  %v375_v32 = vld [vmem:[#allocation6 + $0x68] sm:$0xff]  ;;  %v4238_v33 = vcombine.low %v362_v19, %v366_v20  ;;  %v4240_v34 = vcombine.low %v363_v23, %v367_v24 }
  0x4f   :  { %4236 = vmatprep.subr.msk.bf16.mxu1 %vm157_vm0, %v4229_v18  ;;  %v4247_v35 = vcombine.high %v370_v29, %v374_v30  ;;  %v4249_v36 = vcombine.high %v371_v31, %v375_v32  ;;  %v378_v37 = vld [vmem:[#allocation6 + $0x80] sm:$0xff]  ;;  %v379_v39 = vld [vmem:[#allocation6 + $0x88] sm:$0xff]  ;;  %v4246_v41 = vcombine.low %v370_v29, %v374_v30  ;;  %v4248_v42 = vcombine.low %v371_v31, %v375_v32 }
  0x50   :  { %4231 = vmatmul.mubr.msk.bf16.vlgmr.msra.gmra.mrb[0].mxu0 %vm153_vm1, %v70_v9  ;;  %v382_v38 = vld [vmem:[#allocation6 + $0xa0] sm:$0xff]  ;;  %v383_v40 = vld [vmem:[#allocation6 + $0xa8] sm:$0xff] }
  0x51   :  { %4233 = vmatmul.mubr.msk.bf16.vlgmr.msra.gmra.mrb[0].mxu1 %vm153_vm1, %v70_v9  ;;  %265 = vmatpush1.bf16.msra.mxu0 %v171_v25  ;;  %v4255_v43 = vcombine.high %v378_v37, %v382_v38  ;;  %v4257_v44 = vcombine.high %v379_v39, %v383_v40  ;;  %v386_v45 = vld [vmem:[#allocation6 + $0xc0] sm:$0xff]  ;;  %v387_v47 = vld [vmem:[#allocation6 + $0xc8] sm:$0xff]  ;;  %v4254_v49 = vcombine.low %v378_v37, %v382_v38 }
  0x52   :  { %296 = vmatprep.mubr.bf16.mxu0 %v4920_v0  ;;  %306 = vmatpush1.bf16.msra.mxu1 %v177_v26  ;;  %v390_v46 = vld [vmem:[#allocation6 + $0xe0] sm:$0xff]  ;;  %v391_v48 = vld [vmem:[#allocation6 + $0xe8] sm:$0xff]  ;;  %v4256_v50 = vcombine.low %v379_v39, %v383_v40 }
  0x53   :  { %337 = vmatprep.mubr.bf16.mxu1 %v4920_v0  ;;  %3477 = vmatprep.subr.bf16.mxu0 %v4239_v27  ;;  %v4263_v51 = vcombine.high %v386_v45, %v390_v46  ;;  %v4265_v52 = vcombine.high %v387_v47, %v391_v48  ;;  %v394_v53 = vld [vmem:[#allocation6 + $0x100] sm:$0xff]  ;;  %v395_v55 = vld [vmem:[#allocation6 + $0x108] sm:$0xff]  ;;  %v4262_v57 = vcombine.low %v386_v45, %v390_v46 }
  0x54   :  { %3641 = vmatprep.subr.bf16.mxu1 %v4241_v28  ;;  %v398_v54 = vld [vmem:[#allocation6 + $0x120] sm:$0xff]  ;;  %v399_v56 = vld [vmem:[#allocation6 + $0x128] sm:$0xff]  ;;  %v4264_v58 = vcombine.low %v387_v47, %v391_v48 }
  0x55   :  { %v4271_v59 = vcombine.high %v394_v53, %v398_v54  ;;  %v4273_v60 = vcombine.high %v395_v55, %v399_v56  ;;  %v402_v61 = vld [vmem:[#allocation6 + $0x140] sm:$0xff]  ;;  %v403_v63 = vld [vmem:[#allocation6 + $0x148] sm:$0xff]  ;;  %v4270_v1 = vcombine.low %v394_v53, %v398_v54  ;;  %v4272_v2 = vcombine.low %v395_v55, %v399_v56 }
  0x56   :  { %v406_v62 = vld [vmem:[#allocation6 + $0x160] sm:$0xff]  ;;  %v407_v0 = vld [vmem:[#allocation6 + $0x168] sm:$0xff] }
  0x57   :  { %v4279_v3 = vcombine.high %v402_v61, %v406_v62  ;;  %v4281_v4 = vcombine.high %v403_v63, %v407_v0  ;;  %v410_v5 = vld [vmem:[#allocation6 + $0x180] sm:$0xff]  ;;  %v411_v7 = vld [vmem:[#allocation6 + $0x188] sm:$0xff]  ;;  %v4280_v10 = vcombine.low %v403_v63, %v407_v0 }
  0x58   :  { %4235 = vmatmul.mubr.msk.bf16.vlgmr.msra.gmra.mrb[4].mxu0 %vm153_vm1, %v70_v9  ;;  %v414_v6 = vld [vmem:[#allocation6 + $0x1a0] sm:$0xff]  ;;  %v415_v8 = vld [vmem:[#allocation6 + $0x1a8] sm:$0xff] }
  0x59   :  { %4237 = vmatmul.mubr.msk.bf16.vlgmr.msra.gmra.mrb[4].mxu1 %vm153_vm1, %v70_v9  ;;  %3478 = vmatpush1.bf16.msra.mxu0 %v4238_v33  ;;  %v4278_v9 = vcombine.low %v402_v61, %v406_v62  ;;  %v4287_v11 = vcombine.high %v410_v5, %v414_v6  ;;  %v4289_v12 = vcombine.high %v411_v7, %v415_v8  ;;  %v418_v13 = vld [vmem:[#allocation6 + $0x1c0] sm:$0xff]  ;;  %v419_v15 = vld [vmem:[#allocation6 + $0x1c8] sm:$0xff] }
  0x5a   :  { %3642 = vmatpush1.bf16.msra.mxu1 %v4240_v34  ;;  %3479 = vmatprep.subr.bf16.mxu0 %v4247_v35  ;;  %v422_v14 = vld [vmem:[#allocation6 + $0x1e0] sm:$0xff]  ;;  %v423_v16 = vld [vmem:[#allocation6 + $0x1e8] sm:$0xff]  ;;  %v4286_v17 = vcombine.low %v410_v5, %v414_v6  ;;  %v4288_v18 = vcombine.low %v411_v7, %v415_v8 }
  0x5b   :  { %3643 = vmatprep.subr.bf16.mxu1 %v4249_v36  ;;  %v4295_v19 = vcombine.high %v418_v13, %v422_v14  ;;  %v4297_v20 = vcombine.high %v419_v15, %v423_v16  ;;  %v426_v21 = vld [vmem:[#allocation6 + $0x200] sm:$0xff]  ;;  %v427_v23 = vld [vmem:[#allocation6 + $0x208] sm:$0xff]  ;;  %v4294_v25 = vcombine.low %v418_v13, %v422_v14  ;;  %v4296_v26 = vcombine.low %v419_v15, %v423_v16 }
  0x5c   :  { %v430_v22 = vld [vmem:[#allocation6 + $0x220] sm:$0xff]  ;;  %v431_v24 = vld [vmem:[#allocation6 + $0x228] sm:$0xff] }
  0x5d   :  { %3480 = vmatpush1.bf16.msra.mxu0 %v4246_v41  ;;  %v4303_v27 = vcombine.high %v426_v21, %v430_v22  ;;  %v4305_v28 = vcombine.high %v427_v23, %v431_v24  ;;  %v434_v29 = vld [vmem:[#allocation6 + $0x240] sm:$0xff]  ;;  %v435_v31 = vld [vmem:[#allocation6 + $0x248] sm:$0xff]  ;;  %v4302_v33 = vcombine.low %v426_v21, %v430_v22  ;;  %v4304_v34 = vcombine.low %v427_v23, %v431_v24 }
  0x5e   :  { %3644 = vmatpush1.bf16.msra.mxu1 %v4248_v42  ;;  %3481 = vmatprep.subr.bf16.mxu0 %v4255_v43  ;;  %v438_v30 = vld [vmem:[#allocation6 + $0x260] sm:$0xff]  ;;  %v439_v32 = vld [vmem:[#allocation6 + $0x268] sm:$0xff] }
  0x5f   :  { %3645 = vmatprep.subr.bf16.mxu1 %v4257_v44  ;;  %v4311_v35 = vcombine.high %v434_v29, %v438_v30  ;;  %v4313_v36 = vcombine.high %v435_v31, %v439_v32  ;;  %v442_v37 = vld [vmem:[#allocation6 + $0x280] sm:$0xff]  ;;  %v443_v39 = vld [vmem:[#allocation6 + $0x288] sm:$0xff]  ;;  %v4310_v41 = vcombine.low %v434_v29, %v438_v30  ;;  %v4312_v42 = vcombine.low %v435_v31, %v439_v32 }
  0x60   :  { %v446_v38 = vld [vmem:[#allocation6 + $0x2a0] sm:$0xff]  ;;  %v447_v40 = vld [vmem:[#allocation6 + $0x2a8] sm:$0xff]  ;;  %v81_v31 = vlaneseq }
  0x61   :  { %3482 = vmatpush1.bf16.msra.mxu0 %v4254_v49  ;;  %v4319_v43 = vcombine.high %v442_v37, %v446_v38  ;;  %v4321_v44 = vcombine.high %v443_v39, %v447_v40  ;;  %v450_v45 = vld [vmem:[#allocation6 + $0x2c0] sm:$0xff]  ;;  %v451_v47 = vld [vmem:[#allocation6 + $0x2c8] sm:$0xff]  ;;  %v4318_v49 = vcombine.low %v442_v37, %v446_v38 }
  0x62   :  { %3646 = vmatpush1.bf16.msra.mxu1 %v4256_v50  ;;  %3483 = vmatprep.subr.bf16.mxu0 %v4263_v51  ;;  %v454_v46 = vld [vmem:[#allocation6 + $0x2e0] sm:$0xff]  ;;  %v455_v48 = vld [vmem:[#allocation6 + $0x2e8] sm:$0xff]  ;;  %v4320_v50 = vcombine.low %v443_v39, %v447_v40  ;;  %v5012_v32 = vshrl.u32 %v81_v31, 7 }
  0x63   :  { %3647 = vmatprep.subr.bf16.mxu1 %v4265_v52  ;;  %v4327_v51 = vcombine.high %v450_v45, %v454_v46  ;;  %v4329_v52 = vcombine.high %v451_v47, %v455_v48  ;;  %v458_v53 = vld [vmem:[#allocation6 + $0x300] sm:$0xff]  ;;  %v459_v55 = vld [vmem:[#allocation6 + $0x308] sm:$0xff] }
  0x64   :  { %v462_v54 = vld [vmem:[#allocation6 + $0x320] sm:$0xff]  ;;  %v463_v56 = vld [vmem:[#allocation6 + $0x328] sm:$0xff] }
  0x65   :  { %3484 = vmatpush1.bf16.msra.mxu0 %v4262_v57  ;;  %v4326_v57 = vcombine.low %v450_v45, %v454_v46  ;;  %v466_v61 = vld [vmem:[#allocation6 + $0x340] sm:$0xff]  ;;  %v467_v63 = vld [vmem:[#allocation6 + $0x348] sm:$0xff] }
  0x66   :  { %3648 = vmatpush1.bf16.msra.mxu1 %v4264_v58  ;;  %3485 = vmatprep.subr.bf16.mxu0 %v4271_v59  ;;  %v4328_v58 = vcombine.low %v451_v47, %v455_v48  ;;  %v4335_v59 = vcombine.high %v458_v53, %v462_v54  ;;  %v470_v62 = vld [vmem:[#allocation6 + $0x360] sm:$0xff]  ;;  %v471_v0 = vld [vmem:[#allocation6 + $0x368] sm:$0xff] }
  0x67   :  { %3649 = vmatprep.subr.bf16.mxu1 %v4273_v60  ;;  %v4337_v60 = vcombine.high %v459_v55, %v463_v56  ;;  %v4342_v5 = vcombine.low %v466_v61, %v470_v62  ;;  %v4344_v6 = vcombine.low %v467_v63, %v471_v0  ;;  %v474_v7 = vld [vmem:[#allocation6 + $0x380] sm:$0xff] }
  0x68   :  { %v478_v8 = vld [vmem:[#allocation6 + $0x3a0] sm:$0xff] }
  0x69   :  { %3486 = vmatpush1.bf16.msra.mxu0 %v4270_v1  ;;  %v4334_v1 = vcombine.low %v458_v53, %v462_v54  ;;  %v482_v15 = vld [vmem:[#allocation6 + $0x3c0] sm:$0xff]  ;;  %v499_v54 = vld [vmem:[#allocation6 + $0x448] sm:$0xff] }
  0x6a   :  { %3650 = vmatpush1.bf16.msra.mxu1 %v4272_v2  ;;  %3487 = vmatprep.subr.bf16.mxu0 %v4279_v3  ;;  %v4336_v2 = vcombine.low %v459_v55, %v463_v56  ;;  %v4343_v3 = vcombine.high %v466_v61, %v470_v62  ;;  %v486_v16 = vld [vmem:[#allocation6 + $0x3e0] sm:$0xff]  ;;  %v503_v55 = vld [vmem:[#allocation6 + $0x468] sm:$0xff] }
  0x6b   :  { %3651 = vmatprep.subr.bf16.mxu1 %v4281_v4  ;;  %v4345_v4 = vcombine.high %v467_v63, %v471_v0  ;;  %v490_v23 = vld [vmem:[#allocation6 + $0x400] sm:$0xff]  ;;  %v4377_v61 = vcombine.high %v499_v54, %v503_v55  ;;  %v507_v0 = vld [vmem:[#allocation6 + $0x488] sm:$0xff] }
  0x6c   :  { %v494_v24 = vld [vmem:[#allocation6 + $0x420] sm:$0xff] }
  0x6d   :  { %3488 = vmatpush1.bf16.msra.mxu0 %v4278_v9  ;;  %v475_v9 = vld [vmem:[#allocation6 + $0x388] sm:$0xff]  ;;  %v502_v53 = vld [vmem:[#allocation6 + $0x460] sm:$0xff] }
  0x6e   :  { %3652 = vmatpush1.bf16.msra.mxu1 %v4280_v10  ;;  %3489 = vmatprep.subr.bf16.mxu0 %v4287_v11  ;;  %v4351_v10 = vcombine.high %v474_v7, %v478_v8  ;;  %v479_v11 = vld [vmem:[#allocation6 + $0x3a8] sm:$0xff]  ;;  %v506_v62 = vld [vmem:[#allocation6 + $0x480] sm:$0xff] }
  0x6f   :  { %3653 = vmatprep.subr.bf16.mxu1 %v4289_v12  ;;  %v4350_v12 = vcombine.low %v474_v7, %v478_v8  ;;  %v4352_v13 = vcombine.low %v475_v9, %v479_v11  ;;  %v4353_v14 = vcombine.high %v475_v9, %v479_v11  ;;  %v510_v63 = vld [vmem:[#allocation6 + $0x4a0] sm:$0xff] }
  0x70   :  { %v4383_v8 = vcombine.high %v506_v62, %v510_v63 }
  0x71   :  { %3490 = vmatpush1.bf16.msra.mxu0 %v4286_v17  ;;  %v483_v17 = vld [vmem:[#allocation6 + $0x3c8] sm:$0xff] }
  0x72   :  { %3654 = vmatpush1.bf16.msra.mxu1 %v4288_v18  ;;  %3491 = vmatprep.subr.bf16.mxu0 %v4295_v19  ;;  %v4359_v18 = vcombine.high %v482_v15, %v486_v16  ;;  %v487_v19 = vld [vmem:[#allocation6 + $0x3e8] sm:$0xff] }
  0x73   :  { %3655 = vmatprep.subr.bf16.mxu1 %v4297_v20  ;;  %v4358_v20 = vcombine.low %v482_v15, %v486_v16  ;;  %v4360_v21 = vcombine.low %v483_v17, %v487_v19  ;;  %v4361_v22 = vcombine.high %v483_v17, %v487_v19  ;;  %v4382_v15 = vcombine.low %v506_v62, %v510_v63  ;;  %v522_v19 = vld [vmem:[#allocation6 + $0x500] sm:$0xff] }
  0x74   :  { %v558_v63 = vld [vmem:[#allocation6 + $0x620] sm:$0xff] }
  0x75   :  { %3492 = vmatpush1.bf16.msra.mxu0 %v4294_v25  ;;  %v491_v25 = vld [vmem:[#allocation6 + $0x408] sm:$0xff] }
  0x76   :  { %3656 = vmatpush1.bf16.msra.mxu1 %v4296_v26  ;;  %3493 = vmatprep.subr.bf16.mxu0 %v4303_v27  ;;  %v4367_v26 = vcombine.high %v490_v23, %v494_v24  ;;  %v495_v27 = vld [vmem:[#allocation6 + $0x428] sm:$0xff] }
  0x77   :  { %3657 = vmatprep.subr.bf16.mxu1 %v4305_v28  ;;  %v4366_v28 = vcombine.low %v490_v23, %v494_v24  ;;  %v4368_v29 = vcombine.low %v491_v25, %v495_v27  ;;  %v4369_v30 = vcombine.high %v491_v25, %v495_v27  ;;  %v530_v27 = vld [vmem:[#allocation6 + $0x540] sm:$0xff] }
  0x79   :  { %3494 = vmatpush1.bf16.msra.mxu0 %v4302_v33  ;;  %v5015_v33 = vsub.s32 0, %v5012_v32 }
  0x7a   :  { %3658 = vmatpush1.bf16.msra.mxu1 %v4304_v34  ;;  %3495 = vmatprep.subr.bf16.mxu0 %v4311_v35  ;;  %v5017_v34 = vld [vmem:[#allocation7] ss:$4 sm:$0xff]  ;;  %v5020_v35 = vsub.s32 1, %v5012_v32 }
  0x7b   :  { %3659 = vmatprep.subr.bf16.mxu1 %v4313_v36  ;;  %v5023_v36 = vsub.s32 3, %v5012_v32  ;;  %v84_v37 = vrot.slane %v5017_v34, %v5015_v33 }
  0x7c   :  { %v88_v38 = vrot.slane %v5017_v34, %v5020_v35 }
  0x7d   :  { %3496 = vmatpush1.bf16.msra.mxu0 %v4310_v41  ;;  %v96_v39 = vrot.slane %v5017_v34, %v5023_v36 }
  0x7e   :  { %3660 = vmatpush1.bf16.msra.mxu1 %v4312_v42  ;;  %3497 = vmatprep.subr.bf16.mxu0 %v4319_v43 }
  0x7f   :  { %3661 = vmatprep.subr.bf16.mxu1 %v4321_v44 }
  0x81   :  { %3498 = vmatpush1.bf16.msra.mxu0 %v4318_v49  ;;  %v498_v49 = vld [vmem:[#allocation6 + $0x440] sm:$0xff] }
  0x82   :  { %3662 = vmatpush1.bf16.msra.mxu1 %v4320_v50  ;;  %3499 = vmatprep.subr.bf16.mxu0 %v4327_v51 }
  0x83   :  { %3663 = vmatprep.subr.bf16.mxu1 %v4329_v52 }
  0x85   :  { %3500 = vmatpush1.bf16.msra.mxu0 %v4326_v57 }
  0x86   :  { %3664 = vmatpush1.bf16.msra.mxu1 %v4328_v58  ;;  %3501 = vmatprep.subr.bf16.mxu0 %v4335_v59 }
  0x87   :  { %3665 = vmatprep.subr.bf16.mxu1 %v4337_v60  ;;  %v4375_v60 = vcombine.high %v498_v49, %v502_v53 }
  0x89   :  { %3502 = vmatpush1.bf16.msra.mxu0 %v4334_v1  ;;  %v511_v1 = vld [vmem:[#allocation6 + $0x4a8] sm:$0xff] }
  0x8a   :  { %3666 = vmatpush1.bf16.msra.mxu1 %v4336_v2  ;;  %3503 = vmatprep.subr.bf16.mxu0 %v4343_v3  ;;  %v4385_v9 = vcombine.high %v507_v0, %v511_v1  ;;  %v4384_v16 = vcombine.low %v507_v0, %v511_v1  ;;  %v555_v0 = vld [vmem:[#allocation6 + $0x608] sm:$0xff] }
  0x8b   :  { %3667 = vmatprep.subr.bf16.mxu1 %v4345_v4  ;;  %v559_v1 = vld [vmem:[#allocation6 + $0x628] sm:$0xff] }
  0x8d   :  { %3504 = vmatpush1.bf16.msra.mxu0 %v4342_v5  ;;  %v4374_v5 = vcombine.low %v498_v49, %v502_v53  ;;  %v546_v49 = vld [vmem:[#allocation6 + $0x5c0] sm:$0xff]  ;;  %v551_v53 = vld [vmem:[#allocation6 + $0x5e8] sm:$0xff] }
  0x8e   :  { %3668 = vmatpush1.bf16.msra.mxu1 %v4344_v6  ;;  %3505 = vmatprep.subr.bf16.mxu0 %v4351_v10  ;;  %v4376_v6 = vcombine.low %v499_v54, %v503_v55  ;;  %v514_v10 = vld [vmem:[#allocation6 + $0x4c0] sm:$0xff] }
  0x8f   :  { %3669 = vmatprep.subr.bf16.mxu1 %v4353_v14  ;;  %v519_v14 = vld [vmem:[#allocation6 + $0x4e8] sm:$0xff] }
  0x91   :  { %3506 = vmatpush1.bf16.msra.mxu0 %v4350_v12  ;;  %v518_v12 = vld [vmem:[#allocation6 + $0x4e0] sm:$0xff] }
  0x92   :  { %3670 = vmatpush1.bf16.msra.mxu1 %v4352_v13  ;;  %3507 = vmatprep.subr.bf16.mxu0 %v4359_v18  ;;  %v515_v13 = vld [vmem:[#allocation6 + $0x4c8] sm:$0xff]  ;;  %v4391_v17 = vcombine.high %v514_v10, %v518_v12  ;;  %v4390_v23 = vcombine.low %v514_v10, %v518_v12  ;;  %v562_v10 = vld [vmem:[#allocation6 + $0x640] sm:$0xff] }
  0x93   :  { %3671 = vmatprep.subr.bf16.mxu1 %v4361_v22  ;;  %v4393_v18 = vcombine.high %v515_v13, %v519_v14  ;;  %v527_v22 = vld [vmem:[#allocation6 + $0x528] sm:$0xff]  ;;  %v4392_v24 = vcombine.low %v515_v13, %v519_v14 }
  0x94   :  { %v563_v12 = vld [vmem:[#allocation6 + $0x648] sm:$0xff] }
  0x95   :  { %3508 = vmatpush1.bf16.msra.mxu0 %v4358_v20  ;;  %v526_v20 = vld [vmem:[#allocation6 + $0x520] sm:$0xff]  ;;  %v567_v13 = vld [vmem:[#allocation6 + $0x668] sm:$0xff] }
  0x96   :  { %3672 = vmatpush1.bf16.msra.mxu1 %v4360_v21  ;;  %3518 = vmatprep.subr.bf16.mxu0 %v4367_v26  ;;  %v523_v21 = vld [vmem:[#allocation6 + $0x508] sm:$0xff]  ;;  %v4399_v25 = vcombine.high %v522_v19, %v526_v20  ;;  %v4398_v31 = vcombine.low %v522_v19, %v526_v20  ;;  %v574_v19 = vld [vmem:[#allocation6 + $0x6a0] sm:$0xff] }
  0x97   :  { %3682 = vmatprep.subr.bf16.mxu1 %v4369_v30  ;;  %v4401_v26 = vcombine.high %v523_v21, %v527_v22  ;;  %v535_v30 = vld [vmem:[#allocation6 + $0x568] sm:$0xff] }
  0x98   :  { %v571_v20 = vld [vmem:[#allocation6 + $0x688] sm:$0xff] }
 0x123   :  { %v216_v40 = vpop.f32.mrb[0].mxu0 }
 0x124   :  { %v217_v41 = vadd.f32 %v216_v40, %v84_v37  ;;  %v218_v42 = vpop.f32.mrb[1].mxu0  ;;  %v5031_v43 = vpop.f32.mrb[0].mxu1  ;;  %v4400_v37 = vcombine.low %v523_v21, %v527_v22  ;;  %v538_v40 = vld [vmem:[#allocation6 + $0x580] sm:$0xff]  ;;  %v575_v21 = vld [vmem:[#allocation6 + $0x6a8] sm:$0xff] }
 0x125   :  { %v219_v44 = vadd.f32 %v218_v42, %v88_v38  ;;  %v220_v45 = vpop.f32.mrb[2].mxu0  ;;  %v259_v46 = vpop.f32.mrb[1].mxu1  ;;  %v539_v42 = vld [vmem:[#allocation6 + $0x588] sm:$0xff] }
 0x126   :  { %v346_v47 = vmax.f32 %v217_v41, 0.0  ;;  %v221_v48 = vpop.f32.mrb[3].mxu0  ;;  %v260_v50 = vadd.f32 %v259_v46, %v96_v39  ;;  %v261_v51 = vpop.f32.mrb[2].mxu1  ;;  %v542_v41 = vld [vmem:[#allocation6 + $0x5a0] sm:$0xff] }
 0x127   :  { %v347_v52 = vmax.f32 %v219_v44, 0.0  ;;  %v262_v56 = vpop.f32.mrb[3].mxu1  ;;  %v543_v44 = vld [vmem:[#allocation6 + $0x5a8] sm:$0xff]  ;;  %v550_v51 = vld [vmem:[#allocation6 + $0x5e0] sm:$0xff]  ;;  %v4414_v54 = vcombine.low %v538_v40, %v542_v41 }
 0x128   :  { %v349_v57 = vmax.f32 %v260_v50, 0.0  ;;  %v5035_v59 = vpack.c.bf16 %v346_v47, %v346_v47  ;;  %v4415_v47 = vcombine.high %v538_v40, %v542_v41  ;;  %v4417_v48 = vcombine.high %v539_v42, %v543_v44  ;;  %v590_v40 = vld [vmem:[#allocation6 + $0x720] sm:$0xff]  ;;  %v587_v41 = vld [vmem:[#allocation6 + $0x708] sm:$0xff] }
 0x129   :  { %v5033_v58 = vpack.c.bf16 %v347_v52, %v347_v52  ;;  %v547_v52 = vld [vmem:[#allocation6 + $0x5c8] sm:$0xff]  ;;  %v4416_v55 = vcombine.low %v539_v42, %v543_v44 }
 0x12a   :  { %v5039_v2 = vpack.c.bf16 %v349_v57, %v349_v57  ;;  %v4423_v57 = vcombine.high %v546_v49, %v550_v51  ;;  %v591_v42 = vld [vmem:[#allocation6 + $0x728] sm:$0xff] }
 0x12b   :  { %3509 = vmatprep.mubr.bf16.mxu0 %v5033_v58  ;;  %3673 = vmatprep.mubr.bf16.mxu1 %v5033_v58  ;;  %v5041_v3 = vpop.f32.mrb[4].mxu0 }
 0x12c   :  { %3510 = vmatmul.mubr.bf16.vlgmr.msra.gmra.mrb[8].mxu0 %v5035_v59  ;;  %3674 = vmatmul.mubr.bf16.vlgmr.msra.gmra.mrb[8].mxu1 %v5035_v59  ;;  %v5045_v4 = vpop.f32.mrb[5].mxu0  ;;  %v5049_v50 = vpop.f32.mrb[4].mxu1 }
 0x12d   :  { %3519 = vmatpush1.bf16.msra.mxu0 %v4366_v28  ;;  %3683 = vmatpush1.bf16.msra.mxu1 %v4368_v29  ;;  %v302_v7 = vpop.f32.mrb[6].mxu0  ;;  %v534_v28 = vld [vmem:[#allocation6 + $0x560] sm:$0xff]  ;;  %v531_v29 = vld [vmem:[#allocation6 + $0x548] sm:$0xff]  ;;  %v5051_v56 = vpop.f32.mrb[5].mxu1 }
 0x12e   :  { %3520 = vmatprep.subr.bf16.mxu0 %v4375_v60  ;;  %3684 = vmatprep.subr.bf16.mxu1 %v4377_v61  ;;  %v303_v11 = vpop.f32.mrb[7].mxu0  ;;  %v4407_v38 = vcombine.high %v530_v27, %v534_v28  ;;  %v4409_v39 = vcombine.high %v531_v29, %v535_v30  ;;  %v4406_v45 = vcombine.low %v530_v27, %v534_v28  ;;  %v554_v61 = vld [vmem:[#allocation6 + $0x600] sm:$0xff]  ;;  %v343_v62 = vpop.f32.mrb[6].mxu1  ;;  %v579_v28 = vld [vmem:[#allocation6 + $0x6c8] sm:$0xff] }
 0x12f   :  { %3550 = vmatprep.mubr.bf16.mxu0 %v5039_v2  ;;  %3714 = vmatprep.mubr.bf16.mxu1 %v5039_v2  ;;  %v4408_v46 = vcombine.low %v531_v29, %v535_v30  ;;  %v4425_v60 = vcombine.high %v547_v52, %v551_v53  ;;  %v4424_v7 = vcombine.low %v547_v52, %v551_v53  ;;  %v566_v11 = vld [vmem:[#allocation6 + $0x660] sm:$0xff]  ;;  %v583_v29 = vld [vmem:[#allocation6 + $0x6e8] sm:$0xff]  ;;  %v5054_v53 = vsub.s32 2, %v5012_v32 }
 0x130   :  { %v4430_v14 = vcombine.low %v554_v61, %v558_v63  ;;  %v4438_v22 = vcombine.low %v562_v10, %v566_v11  ;;  %v582_v27 = vld [vmem:[#allocation6 + $0x6e0] sm:$0xff]  ;;  %v599_v52 = vld [vmem:[#allocation6 + $0x768] sm:$0xff] }
 0x131   :  { %3521 = vmatpush1.bf16.msra.mxu0 %v4374_v5  ;;  %3685 = vmatpush1.bf16.msra.mxu1 %v4376_v6  ;;  %v344_v5 = vpop.f32.mrb[7].mxu1  ;;  %v4422_v6 = vcombine.low %v546_v49, %v550_v51  ;;  %v598_v49 = vld [vmem:[#allocation6 + $0x760] sm:$0xff]  ;;  %v595_v51 = vld [vmem:[#allocation6 + $0x748] sm:$0xff] }
 0x132   :  { %3522 = vmatprep.subr.bf16.mxu0 %v4383_v8  ;;  %3686 = vmatprep.subr.bf16.mxu1 %v4385_v9  ;;  %v4431_v8 = vcombine.high %v554_v61, %v558_v63  ;;  %v4433_v9 = vcombine.high %v555_v0, %v559_v1  ;;  %v602_v61 = vld [vmem:[#allocation6 + $0x780] sm:$0xff]  ;;  %v603_v63 = vld [vmem:[#allocation6 + $0x788] sm:$0xff]  ;;  %v92_v5 = vrot.slane %v5017_v34, %v5054_v53 }
 0x133   :  { %v606_v62 = vld [vmem:[#allocation6 + $0x7a0] sm:$0xff] }
 0x135   :  { %3523 = vmatpush1.bf16.msra.mxu0 %v4382_v15  ;;  %3687 = vmatpush1.bf16.msra.mxu1 %v4384_v16  ;;  %v4432_v15 = vcombine.low %v555_v0, %v559_v1  ;;  %v4439_v16 = vcombine.high %v562_v10, %v566_v11  ;;  %v607_v0 = vld [vmem:[#allocation6 + $0x7a8] sm:$0xff]  ;;  %v5057_v1 = vsub.s32 5, %v5012_v32  ;;  %v610_v10 = vld [vmem:[#allocation6 + $0x7c0] sm:$0xff] }
 0x136   :  { %3524 = vmatprep.subr.bf16.mxu0 %v4391_v17  ;;  %3688 = vmatprep.subr.bf16.mxu1 %v4393_v18  ;;  %v4441_v17 = vcombine.high %v563_v12, %v567_v13  ;;  %v570_v18 = vld [vmem:[#allocation6 + $0x680] sm:$0xff] }
 0x137   :  { %v4446_v30 = vcombine.low %v570_v18, %v574_v19  ;;  %v614_v11 = vld [vmem:[#allocation6 + $0x7e0] sm:$0xff] }
 0x139   :  { %3525 = vmatpush1.bf16.msra.mxu0 %v4390_v23  ;;  %3689 = vmatpush1.bf16.msra.mxu1 %v4392_v24  ;;  %v4440_v23 = vcombine.low %v563_v12, %v567_v13  ;;  %v4447_v24 = vcombine.high %v570_v18, %v574_v19  ;;  %v611_v12 = vld [vmem:[#allocation6 + $0x7c8] sm:$0xff]  ;;  %v4487_v18 = vcombine.high %v610_v10, %v614_v11 }
 0x13a   :  { %3526 = vmatprep.subr.bf16.mxu0 %v4399_v25  ;;  %3690 = vmatprep.subr.bf16.mxu1 %v4401_v26  ;;  %v4449_v25 = vcombine.high %v571_v20, %v575_v21  ;;  %v578_v26 = vld [vmem:[#allocation6 + $0x6c0] sm:$0xff]  ;;  %v615_v13 = vld [vmem:[#allocation6 + $0x7e8] sm:$0xff] }
 0x13b   :  { %v4454_v44 = vcombine.low %v578_v26, %v582_v27  ;;  %v4489_v19 = vcombine.high %v611_v12, %v615_v13 }
 0x13d   :  { %3527 = vmatpush1.bf16.msra.mxu0 %v4398_v31  ;;  %3691 = vmatpush1.bf16.msra.mxu1 %v4400_v37  ;;  %v4448_v31 = vcombine.low %v571_v20, %v575_v21  ;;  %v4455_v37 = vcombine.high %v578_v26, %v582_v27  ;;  %v618_v20 = vld [vmem:[#allocation6 + $0x800] sm:$0xff]  ;;  %v4486_v26 = vcombine.low %v610_v10, %v614_v11 }
 0x13e   :  { %3528 = vmatprep.subr.bf16.mxu0 %v4407_v38  ;;  %3692 = vmatprep.subr.bf16.mxu1 %v4409_v39  ;;  %v4457_v38 = vcombine.high %v579_v28, %v583_v29  ;;  %v586_v39 = vld [vmem:[#allocation6 + $0x700] sm:$0xff]  ;;  %v4488_v27 = vcombine.low %v611_v12, %v615_v13 }
 0x13f   :  { %v622_v21 = vld [vmem:[#allocation6 + $0x820] sm:$0xff] }
 0x141   :  { %3529 = vmatpush1.bf16.msra.mxu0 %v4406_v45  ;;  %3693 = vmatpush1.bf16.msra.mxu1 %v4408_v46  ;;  %v4456_v45 = vcombine.low %v579_v28, %v583_v29  ;;  %v4463_v46 = vcombine.high %v586_v39, %v590_v40  ;;  %v626_v29 = vld [vmem:[#allocation6 + $0x840] sm:$0xff] }
 0x142   :  { %3530 = vmatprep.subr.bf16.mxu0 %v4415_v47  ;;  %3694 = vmatprep.subr.bf16.mxu1 %v4417_v48  ;;  %v4465_v47 = vcombine.high %v587_v41, %v591_v42  ;;  %v594_v48 = vld [vmem:[#allocation6 + $0x740] sm:$0xff] }
 0x145   :  { %3531 = vmatpush1.bf16.msra.mxu0 %v4414_v54  ;;  %3695 = vmatpush1.bf16.msra.mxu1 %v4416_v55  ;;  %v4462_v54 = vcombine.low %v586_v39, %v590_v40  ;;  %v4464_v55 = vcombine.low %v587_v41, %v591_v42  ;;  %v4494_v40 = vcombine.low %v618_v20, %v622_v21 }
 0x146   :  { %3532 = vmatprep.subr.bf16.mxu0 %v4423_v57  ;;  %3696 = vmatprep.subr.bf16.mxu1 %v4425_v60  ;;  %v4471_v57 = vcombine.high %v594_v48, %v598_v49  ;;  %v4473_v60 = vcombine.high %v595_v51, %v599_v52 }
 0x149   :  { %3533 = vmatpush1.bf16.msra.mxu0 %v4422_v6  ;;  %3697 = vmatpush1.bf16.msra.mxu1 %v4424_v7  ;;  %v4470_v6 = vcombine.low %v594_v48, %v598_v49  ;;  %v4472_v7 = vcombine.low %v595_v51, %v599_v52 }
 0x14a   :  { %3534 = vmatprep.subr.bf16.mxu0 %v4431_v8  ;;  %3698 = vmatprep.subr.bf16.mxu1 %v4433_v9  ;;  %v4479_v8 = vcombine.high %v602_v61, %v606_v62  ;;  %v4481_v9 = vcombine.high %v603_v63, %v607_v0 }
 0x14d   :  { %3535 = vmatpush1.bf16.msra.mxu0 %v4430_v14  ;;  %3699 = vmatpush1.bf16.msra.mxu1 %v4432_v15  ;;  %v104_v14 = vrot.slane %v5017_v34, %v5057_v1  ;;  %v258_v15 = vadd.f32 %v5031_v43, %v92_v5  ;;  %v4495_v43 = vcombine.high %v618_v20, %v622_v21 }
 0x14e   :  { %3536 = vmatprep.subr.bf16.mxu0 %v4439_v16  ;;  %3700 = vmatprep.subr.bf16.mxu1 %v4441_v17  ;;  %v4478_v16 = vcombine.low %v602_v61, %v606_v62  ;;  %v4480_v17 = vcombine.low %v603_v63, %v607_v0  ;;  %v647_v61 = vld [vmem:[#allocation6 + $0x8e8] sm:$0xff] }
 0x151   :  { %3537 = vmatpush1.bf16.msra.mxu0 %v4438_v22  ;;  %3701 = vmatpush1.bf16.msra.mxu1 %v4440_v23  ;;  %v619_v22 = vld [vmem:[#allocation6 + $0x808] sm:$0xff] }
 0x152   :  { %3538 = vmatprep.subr.bf16.mxu0 %v4447_v24  ;;  %3702 = vmatprep.subr.bf16.mxu1 %v4449_v25  ;;  %v623_v23 = vld [vmem:[#allocation6 + $0x828] sm:$0xff]  ;;  %v301_v24 = vadd.f32 %v5045_v4, %v104_v14  ;;  %v348_v25 = vmax.f32 %v258_v15, 0.0  ;;  %v658_v14 = vld [vmem:[#allocation6 + $0x940] sm:$0xff] }
 0x153   :  { %v4497_v28 = vcombine.high %v619_v22, %v623_v23  ;;  %v4496_v4 = vcombine.low %v619_v22, %v623_v23  ;;  %v662_v15 = vld [vmem:[#allocation6 + $0x960] sm:$0xff] }
 0x154   :  { %v5065_v39 = vpack.c.bf16 %v348_v25, %v348_v25  ;;  %v4535_v20 = vcombine.high %v658_v14, %v662_v15  ;;  %v666_v22 = vld [vmem:[#allocation6 + $0x980] sm:$0xff]  ;;  %v671_v25 = vld [vmem:[#allocation6 + $0x9a8] sm:$0xff] }
 0x155   :  { %3539 = vmatpush1.bf16.msra.mxu0 %v4446_v30  ;;  %3703 = vmatpush1.bf16.msra.mxu1 %v4448_v31  ;;  %v630_v30 = vld [vmem:[#allocation6 + $0x860] sm:$0xff]  ;;  %v627_v31 = vld [vmem:[#allocation6 + $0x848] sm:$0xff] }
 0x156   :  { %3540 = vmatprep.subr.bf16.mxu0 %v4455_v37  ;;  %3704 = vmatprep.subr.bf16.mxu1 %v4457_v38  ;;  %v631_v37 = vld [vmem:[#allocation6 + $0x868] sm:$0xff]  ;;  %v351_v38 = vmax.f32 %v301_v24, 0.0  ;;  %v4503_v41 = vcombine.high %v626_v29, %v630_v30  ;;  %v4502_v49 = vcombine.low %v626_v29, %v630_v30  ;;  %v670_v23 = vld [vmem:[#allocation6 + $0x9a0] sm:$0xff] }
 0x157   :  { %v4505_v42 = vcombine.high %v627_v31, %v631_v37  ;;  %v4504_v51 = vcombine.low %v627_v31, %v631_v37  ;;  %v667_v24 = vld [vmem:[#allocation6 + $0x988] sm:$0xff]  ;;  %v674_v29 = vld [vmem:[#allocation6 + $0x9c0] sm:$0xff] }
 0x158   :  { %v5067_v48 = vpack.c.bf16 %v351_v38, %v351_v38  ;;  %v678_v30 = vld [vmem:[#allocation6 + $0x9e0] sm:$0xff]  ;;  %v675_v31 = vld [vmem:[#allocation6 + $0x9c8] sm:$0xff]  ;;  %v4542_v38 = vcombine.low %v666_v22, %v670_v23 }
 0x159   :  { %3541 = vmatpush1.bf16.msra.mxu0 %v4454_v44  ;;  %3705 = vmatpush1.bf16.msra.mxu1 %v4456_v45  ;;  %v634_v44 = vld [vmem:[#allocation6 + $0x880] sm:$0xff]  ;;  %v679_v37 = vld [vmem:[#allocation6 + $0x9e8] sm:$0xff] }
 0x15a   :  { %3542 = vmatprep.subr.bf16.mxu0 %v4463_v46  ;;  %3706 = vmatprep.subr.bf16.mxu1 %v4465_v47  ;;  %v638_v45 = vld [vmem:[#allocation6 + $0x8a0] sm:$0xff]  ;;  %v635_v46 = vld [vmem:[#allocation6 + $0x888] sm:$0xff] }
 0x15b   :  { %v639_v47 = vld [vmem:[#allocation6 + $0x8a8] sm:$0xff]  ;;  %v4511_v52 = vcombine.high %v634_v44, %v638_v45  ;;  %v4510_v62 = vcombine.low %v634_v44, %v638_v45  ;;  %v686_v44 = vld [vmem:[#allocation6 + $0xa20] sm:$0xff] }
 0x15c   :  { %v4512_v63 = vcombine.low %v635_v46, %v639_v47  ;;  %v683_v45 = vld [vmem:[#allocation6 + $0xa08] sm:$0xff] }
 0x15d   :  { %3543 = vmatpush1.bf16.msra.mxu0 %v4462_v54  ;;  %3707 = vmatpush1.bf16.msra.mxu1 %v4464_v55  ;;  %v4513_v54 = vcombine.high %v635_v46, %v639_v47  ;;  %v642_v55 = vld [vmem:[#allocation6 + $0x8c0] sm:$0xff]  ;;  %v687_v46 = vld [vmem:[#allocation6 + $0xa28] sm:$0xff]  ;;  %v4550_v47 = vcombine.low %v674_v29, %v678_v30 }
 0x15e   :  { %3544 = vmatprep.subr.bf16.mxu0 %v4471_v57  ;;  %3708 = vmatprep.subr.bf16.mxu1 %v4473_v60  ;;  %v646_v57 = vld [vmem:[#allocation6 + $0x8e0] sm:$0xff]  ;;  %v643_v60 = vld [vmem:[#allocation6 + $0x8c8] sm:$0xff] }
 0x15f   :  { %v4519_v0 = vcombine.high %v642_v55, %v646_v57  ;;  %v4521_v5 = vcombine.high %v643_v60, %v647_v61  ;;  %v4518_v10 = vcombine.low %v642_v55, %v646_v57  ;;  %v4520_v11 = vcombine.low %v643_v60, %v647_v61  ;;  %v694_v55 = vld [vmem:[#allocation6 + $0xa60] sm:$0xff]  ;;  %v691_v57 = vld [vmem:[#allocation6 + $0xa48] sm:$0xff] }
 0x160   :  { %v695_v60 = vld [vmem:[#allocation6 + $0xa68] sm:$0xff] }
 0x161   :  { %3545 = vmatpush1.bf16.msra.mxu0 %v4470_v6  ;;  %3709 = vmatpush1.bf16.msra.mxu1 %v4472_v7  ;;  %v650_v6 = vld [vmem:[#allocation6 + $0x900] sm:$0xff] }
 0x162   :  { %3546 = vmatprep.subr.bf16.mxu0 %v4479_v8  ;;  %3710 = vmatprep.subr.bf16.mxu1 %v4481_v9  ;;  %v654_v7 = vld [vmem:[#allocation6 + $0x920] sm:$0xff]  ;;  %v651_v8 = vld [vmem:[#allocation6 + $0x908] sm:$0xff] }
 0x163   :  { %v655_v9 = vld [vmem:[#allocation6 + $0x928] sm:$0xff]  ;;  %v4527_v12 = vcombine.high %v650_v6, %v654_v7 }
 0x164   :  { %v4529_v13 = vcombine.high %v651_v8, %v655_v9 }
 0x165   :  { %3547 = vmatpush1.bf16.msra.mxu0 %v4478_v16  ;;  %3711 = vmatpush1.bf16.msra.mxu1 %v4480_v17  ;;  %v659_v16 = vld [vmem:[#allocation6 + $0x948] sm:$0xff] }
 0x166   :  { %3548 = vmatprep.subr.bf16.mxu0 %v4487_v18  ;;  %3712 = vmatprep.subr.bf16.mxu1 %v4489_v19  ;;  %v663_v17 = vld [vmem:[#allocation6 + $0x968] sm:$0xff]  ;;  %v4526_v18 = vcombine.low %v650_v6, %v654_v7  ;;  %v4528_v19 = vcombine.low %v651_v8, %v655_v9  ;;  %v702_v6 = vld [vmem:[#allocation6 + $0xaa0] sm:$0xff] }
 0x167   :  { %v4537_v21 = vcombine.high %v659_v16, %v663_v17  ;;  %v699_v7 = vld [vmem:[#allocation6 + $0xa88] sm:$0xff] }
 0x168   :  { %v703_v8 = vld [vmem:[#allocation6 + $0xaa8] sm:$0xff] }
 0x169   :  { %3549 = vmatpush1.bf16.msra.mxu0 %v4486_v26  ;;  %3713 = vmatpush1.bf16.msra.mxu1 %v4488_v27  ;;  %v4534_v26 = vcombine.low %v658_v14, %v662_v15  ;;  %v4536_v27 = vcombine.low %v659_v16, %v663_v17  ;;  %v710_v14 = vld [vmem:[#allocation6 + $0xae0] sm:$0xff]  ;;  %v707_v15 = vld [vmem:[#allocation6 + $0xac8] sm:$0xff] }
 0x16a   :  { %3559 = vmatprep.subr.bf16.mxu0 %v4495_v43  ;;  %3723 = vmatprep.subr.bf16.mxu1 %v4497_v28  ;;  %v4543_v43 = vcombine.high %v666_v22, %v670_v23  ;;  %v4545_v28 = vcombine.high %v667_v24, %v671_v25  ;;  %v711_v16 = vld [vmem:[#allocation6 + $0xae8] sm:$0xff]  ;;  %v718_v22 = vld [vmem:[#allocation6 + $0xb20] sm:$0xff] }
 0x16b   :  { %v715_v23 = vld [vmem:[#allocation6 + $0xb08] sm:$0xff] }
 0x16c   :  { %3551 = vmatmul.mubr.bf16.vlgmr.msra.gmra.mrb[8].mxu0 %v5065_v39  ;;  %3715 = vmatmul.mubr.bf16.vlgmr.msra.gmra.mrb[8].mxu1 %v5065_v39 }
 0x16d   :  { %3560 = vmatpush1.bf16.msra.mxu0 %v4494_v40  ;;  %3724 = vmatpush1.bf16.msra.mxu1 %v4496_v4  ;;  %v4544_v40 = vcombine.low %v667_v24, %v671_v25  ;;  %v4551_v4 = vcombine.high %v674_v29, %v678_v30  ;;  %v719_v24 = vld [vmem:[#allocation6 + $0xb28] sm:$0xff]  ;;  %v726_v29 = vld [vmem:[#allocation6 + $0xb60] sm:$0xff] }
 0x16e   :  { %3561 = vmatprep.subr.bf16.mxu0 %v4503_v41  ;;  %3725 = vmatprep.subr.bf16.mxu1 %v4505_v42  ;;  %v4553_v41 = vcombine.high %v675_v31, %v679_v37  ;;  %v682_v42 = vld [vmem:[#allocation6 + $0xa00] sm:$0xff]  ;;  %v723_v30 = vld [vmem:[#allocation6 + $0xb48] sm:$0xff] }
 0x16f   :  { %3591 = vmatprep.mubr.bf16.mxu0 %v5067_v48  ;;  %3755 = vmatprep.mubr.bf16.mxu1 %v5067_v48  ;;  %v4558_v61 = vcombine.low %v682_v42, %v686_v44 }
 0x171   :  { %3562 = vmatpush1.bf16.msra.mxu0 %v4502_v49  ;;  %3726 = vmatpush1.bf16.msra.mxu1 %v4504_v51  ;;  %v4552_v49 = vcombine.low %v675_v31, %v679_v37  ;;  %v4559_v51 = vcombine.high %v682_v42, %v686_v44  ;;  %v727_v31 = vld [vmem:[#allocation6 + $0xb68] sm:$0xff]  ;;  %v5074_v37 = vsub.s32 4, %v5012_v32  ;;  %v730_v42 = vld [vmem:[#allocation6 + $0xb80] sm:$0xff] }
 0x172   :  { %3563 = vmatprep.subr.bf16.mxu0 %v4511_v52  ;;  %3727 = vmatprep.subr.bf16.mxu1 %v4513_v54  ;;  %v4561_v52 = vcombine.high %v683_v45, %v687_v46  ;;  %v690_v54 = vld [vmem:[#allocation6 + $0xa40] sm:$0xff] }
 0x173   :  { %v4566_v9 = vcombine.low %v690_v54, %v694_v55  ;;  %v734_v44 = vld [vmem:[#allocation6 + $0xba0] sm:$0xff] }
 0x175   :  { %3564 = vmatpush1.bf16.msra.mxu0 %v4510_v62  ;;  %3728 = vmatpush1.bf16.msra.mxu1 %v4512_v63  ;;  %v4560_v62 = vcombine.low %v683_v45, %v687_v46  ;;  %v4567_v63 = vcombine.high %v690_v54, %v694_v55  ;;  %v731_v45 = vld [vmem:[#allocation6 + $0xb88] sm:$0xff]  ;;  %v4607_v54 = vcombine.high %v730_v42, %v734_v44 }
 0x176   :  { %3565 = vmatprep.subr.bf16.mxu0 %v4519_v0  ;;  %3729 = vmatprep.subr.bf16.mxu1 %v4521_v5  ;;  %v4569_v0 = vcombine.high %v691_v57, %v695_v60  ;;  %v698_v5 = vld [vmem:[#allocation6 + $0xa80] sm:$0xff]  ;;  %v735_v46 = vld [vmem:[#allocation6 + $0xba8] sm:$0xff] }
 0x177   :  { %v4574_v17 = vcombine.low %v698_v5, %v702_v6  ;;  %v4609_v55 = vcombine.high %v731_v45, %v735_v46 }
 0x179   :  { %3566 = vmatpush1.bf16.msra.mxu0 %v4518_v10  ;;  %3730 = vmatpush1.bf16.msra.mxu1 %v4520_v11  ;;  %v4568_v10 = vcombine.low %v691_v57, %v695_v60  ;;  %v4575_v11 = vcombine.high %v698_v5, %v702_v6  ;;  %v738_v57 = vld [vmem:[#allocation6 + $0xbc0] sm:$0xff]  ;;  %v4606_v5 = vcombine.low %v730_v42, %v734_v44  ;;  %v771_v42 = vld [vmem:[#allocation6 + $0xcc8] sm:$0xff] }
 0x17a   :  { %3567 = vmatprep.subr.bf16.mxu0 %v4527_v12  ;;  %3731 = vmatprep.subr.bf16.mxu1 %v4529_v13  ;;  %v4577_v12 = vcombine.high %v699_v7, %v703_v8  ;;  %v706_v13 = vld [vmem:[#allocation6 + $0xac0] sm:$0xff]  ;;  %v4608_v6 = vcombine.low %v731_v45, %v735_v46  ;;  %v775_v44 = vld [vmem:[#allocation6 + $0xce8] sm:$0xff] }
 0x17b   :  { %v4582_v25 = vcombine.low %v706_v13, %v710_v14  ;;  %v742_v60 = vld [vmem:[#allocation6 + $0xbe0] sm:$0xff] }
 0x17d   :  { %3568 = vmatpush1.bf16.msra.mxu0 %v4526_v18  ;;  %3732 = vmatpush1.bf16.msra.mxu1 %v4528_v19  ;;  %v4576_v18 = vcombine.low %v699_v7, %v703_v8  ;;  %v4583_v19 = vcombine.high %v706_v13, %v710_v14  ;;  %v4615_v7 = vcombine.high %v738_v57, %v742_v60 }
 0x17e   :  { %3569 = vmatprep.subr.bf16.mxu0 %v4535_v20  ;;  %3733 = vmatprep.subr.bf16.mxu1 %v4537_v21  ;;  %v4585_v20 = vcombine.high %v707_v15, %v711_v16  ;;  %v714_v21 = vld [vmem:[#allocation6 + $0xb00] sm:$0xff] }
 0x181   :  { %3570 = vmatpush1.bf16.msra.mxu0 %v4534_v26  ;;  %3734 = vmatpush1.bf16.msra.mxu1 %v4536_v27  ;;  %v4584_v26 = vcombine.low %v707_v15, %v711_v16  ;;  %v4591_v27 = vcombine.high %v714_v21, %v718_v22 }
 0x182   :  { %3571 = vmatprep.subr.bf16.mxu0 %v4543_v43  ;;  %3735 = vmatprep.subr.bf16.mxu1 %v4545_v28  ;;  %v4593_v43 = vcombine.high %v715_v23, %v719_v24  ;;  %v722_v28 = vld [vmem:[#allocation6 + $0xb40] sm:$0xff] }
 0x185   :  { %3572 = vmatpush1.bf16.msra.mxu0 %v4542_v38  ;;  %3736 = vmatpush1.bf16.msra.mxu1 %v4544_v40  ;;  %v4590_v38 = vcombine.low %v714_v21, %v718_v22  ;;  %v4592_v40 = vcombine.low %v715_v23, %v719_v24 }
 0x186   :  { %3573 = vmatprep.subr.bf16.mxu0 %v4551_v4  ;;  %3737 = vmatprep.subr.bf16.mxu1 %v4553_v41  ;;  %v4599_v4 = vcombine.high %v722_v28, %v726_v29  ;;  %v4601_v41 = vcombine.high %v723_v30, %v727_v31 }
 0x189   :  { %3574 = vmatpush1.bf16.msra.mxu0 %v4550_v47  ;;  %3738 = vmatpush1.bf16.msra.mxu1 %v4552_v49  ;;  %v5077_v47 = vsub.s32 7, %v5012_v32  ;;  %v100_v49 = vrot.slane %v5017_v34, %v5074_v37 }
 0x18a   :  { %3575 = vmatprep.subr.bf16.mxu0 %v4559_v51  ;;  %3739 = vmatprep.subr.bf16.mxu1 %v4561_v52  ;;  %v4598_v51 = vcombine.low %v722_v28, %v726_v29  ;;  %v4600_v52 = vcombine.low %v723_v30, %v727_v31  ;;  %v767_v28 = vld [vmem:[#allocation6 + $0xca8] sm:$0xff] }
 0x18d   :  { %3576 = vmatpush1.bf16.msra.mxu0 %v4558_v61  ;;  %3740 = vmatpush1.bf16.msra.mxu1 %v4560_v62  ;;  %v739_v61 = vld [vmem:[#allocation6 + $0xbc8] sm:$0xff] }
 0x18e   :  { %3577 = vmatprep.subr.bf16.mxu0 %v4567_v63  ;;  %3741 = vmatprep.subr.bf16.mxu1 %v4569_v0  ;;  %v743_v62 = vld [vmem:[#allocation6 + $0xbe8] sm:$0xff]  ;;  %v112_v63 = vrot.slane %v5017_v34, %v5077_v47  ;;  %v299_v0 = vadd.f32 %v5041_v3, %v100_v49  ;;  %v4614_v34 = vcombine.low %v738_v57, %v742_v60 }
 0x18f   :  { %v4617_v8 = vcombine.high %v739_v61, %v743_v62  ;;  %v4616_v15 = vcombine.low %v739_v61, %v743_v62  ;;  %v783_v57 = vld [vmem:[#allocation6 + $0xd28] sm:$0xff]  ;;  %v4648_v61 = vcombine.low %v771_v42, %v775_v44 }
 0x190   :  { %v342_v13 = vadd.f32 %v5051_v56, %v112_v63  ;;  %v350_v14 = vmax.f32 %v299_v0, 0.0  ;;  %v786_v0 = vld [vmem:[#allocation6 + $0xd40] sm:$0xff] }
 0x191   :  { %3578 = vmatpush1.bf16.msra.mxu0 %v4566_v9  ;;  %3742 = vmatpush1.bf16.msra.mxu1 %v4568_v10  ;;  %v746_v9 = vld [vmem:[#allocation6 + $0xc00] sm:$0xff] }
 0x192   :  { %3579 = vmatprep.subr.bf16.mxu0 %v4575_v11  ;;  %3743 = vmatprep.subr.bf16.mxu1 %v4577_v12  ;;  %v750_v10 = vld [vmem:[#allocation6 + $0xc20] sm:$0xff]  ;;  %v747_v11 = vld [vmem:[#allocation6 + $0xc08] sm:$0xff]  ;;  %v353_v21 = vmax.f32 %v342_v13, 0.0  ;;  %v5085_v22 = vpack.c.bf16 %v350_v14, %v350_v14 }
 0x193   :  { %v751_v12 = vld [vmem:[#allocation6 + $0xc28] sm:$0xff]  ;;  %v4623_v3 = vcombine.high %v746_v9, %v750_v10  ;;  %v4622_v23 = vcombine.low %v746_v9, %v750_v10  ;;  %v798_v13 = vld [vmem:[#allocation6 + $0xda0] sm:$0xff] }
 0x194   :  { %v4625_v16 = vcombine.high %v747_v11, %v751_v12  ;;  %v4624_v56 = vcombine.low %v747_v11, %v751_v12  ;;  %v5087_v29 = vpack.c.bf16 %v353_v21, %v353_v21  ;;  %v794_v12 = vld [vmem:[#allocation6 + $0xd80] sm:$0xff]  ;;  %v795_v14 = vld [vmem:[#allocation6 + $0xd88] sm:$0xff] }
 0x195   :  { %3580 = vmatpush1.bf16.msra.mxu0 %v4574_v17  ;;  %3744 = vmatpush1.bf16.msra.mxu1 %v4576_v18  ;;  %v754_v17 = vld [vmem:[#allocation6 + $0xc40] sm:$0xff]  ;;  %v807_v21 = vld [vmem:[#allocation6 + $0xde8] sm:$0xff] }
 0x196   :  { %3581 = vmatprep.subr.bf16.mxu0 %v4583_v19  ;;  %3745 = vmatprep.subr.bf16.mxu1 %v4585_v20  ;;  %v758_v18 = vld [vmem:[#allocation6 + $0xc60] sm:$0xff]  ;;  %v755_v19 = vld [vmem:[#allocation6 + $0xc48] sm:$0xff] }
 0x197   :  { %v759_v20 = vld [vmem:[#allocation6 + $0xc68] sm:$0xff]  ;;  %v4631_v24 = vcombine.high %v754_v17, %v758_v18  ;;  %v4630_v30 = vcombine.low %v754_v17, %v758_v18  ;;  %v802_v18 = vld [vmem:[#allocation6 + $0xdc0] sm:$0xff] }
 0x198   :  { %v4632_v31 = vcombine.low %v755_v19, %v759_v20 }
 0x199   :  { %3582 = vmatpush1.bf16.msra.mxu0 %v4582_v25  ;;  %3746 = vmatpush1.bf16.msra.mxu1 %v4584_v26  ;;  %v4633_v25 = vcombine.high %v755_v19, %v759_v20  ;;  %v762_v26 = vld [vmem:[#allocation6 + $0xc80] sm:$0xff]  ;;  %v803_v20 = vld [vmem:[#allocation6 + $0xdc8] sm:$0xff] }
 0x19a   :  { %3583 = vmatprep.subr.bf16.mxu0 %v4591_v27  ;;  %3747 = vmatprep.subr.bf16.mxu1 %v4593_v43  ;;  %v766_v27 = vld [vmem:[#allocation6 + $0xca0] sm:$0xff]  ;;  %v763_v43 = vld [vmem:[#allocation6 + $0xc88] sm:$0xff] }
 0x19b   :  { %v4638_v45 = vcombine.low %v762_v26, %v766_v27  ;;  %v4640_v46 = vcombine.low %v763_v43, %v767_v28  ;;  %v806_v19 = vld [vmem:[#allocation6 + $0xde0] sm:$0xff] }
 0x19d   :  { %3584 = vmatpush1.bf16.msra.mxu0 %v4590_v38  ;;  %3748 = vmatpush1.bf16.msra.mxu1 %v4592_v40  ;;  %v4639_v38 = vcombine.high %v762_v26, %v766_v27  ;;  %v4641_v40 = vcombine.high %v763_v43, %v767_v28  ;;  %v810_v26 = vld [vmem:[#allocation6 + $0xe00] sm:$0xff]  ;;  %v811_v43 = vld [vmem:[#allocation6 + $0xe08] sm:$0xff] }
 0x19e   :  { %3585 = vmatprep.subr.bf16.mxu0 %v4599_v4  ;;  %3749 = vmatprep.subr.bf16.mxu1 %v4601_v41  ;;  %v770_v4 = vld [vmem:[#allocation6 + $0xcc0] sm:$0xff]  ;;  %v815_v28 = vld [vmem:[#allocation6 + $0xe28] sm:$0xff] }
 0x19f   :  { %v774_v41 = vld [vmem:[#allocation6 + $0xce0] sm:$0xff] }
 0x1a0   :  { %v4647_v49 = vcombine.high %v770_v4, %v774_v41  ;;  %v4646_v60 = vcombine.low %v770_v4, %v774_v41  ;;  %v814_v27 = vld [vmem:[#allocation6 + $0xe20] sm:$0xff] }
 0x1a1   :  { %3586 = vmatpush1.bf16.msra.mxu0 %v4598_v51  ;;  %3750 = vmatpush1.bf16.msra.mxu1 %v4600_v52  ;;  %v4649_v51 = vcombine.high %v771_v42, %v775_v44  ;;  %v778_v52 = vld [vmem:[#allocation6 + $0xd00] sm:$0xff]  ;;  %v819_v42 = vld [vmem:[#allocation6 + $0xe48] sm:$0xff] }
 0x1a2   :  { %3587 = vmatprep.subr.bf16.mxu0 %v4607_v54  ;;  %3751 = vmatprep.subr.bf16.mxu1 %v4609_v55  ;;  %v782_v54 = vld [vmem:[#allocation6 + $0xd20] sm:$0xff]  ;;  %v779_v55 = vld [vmem:[#allocation6 + $0xd08] sm:$0xff] }
 0x1a3   :  { %v4655_v62 = vcombine.high %v778_v52, %v782_v54  ;;  %v4657_v63 = vcombine.high %v779_v55, %v783_v57  ;;  %v4656_v9 = vcombine.low %v779_v55, %v783_v57  ;;  %v818_v4 = vld [vmem:[#allocation6 + $0xe40] sm:$0xff]  ;;  %v823_v44 = vld [vmem:[#allocation6 + $0xe68] sm:$0xff] }
 0x1a4   :  { %v822_v41 = vld [vmem:[#allocation6 + $0xe60] sm:$0xff]  ;;  %v827_v55 = vld [vmem:[#allocation6 + $0xe88] sm:$0xff] }
 0x1a5   :  { %3588 = vmatpush1.bf16.msra.mxu0 %v4606_v5  ;;  %3752 = vmatpush1.bf16.msra.mxu1 %v4608_v6  ;;  %v790_v5 = vld [vmem:[#allocation6 + $0xd60] sm:$0xff]  ;;  %v787_v6 = vld [vmem:[#allocation6 + $0xd48] sm:$0xff] }
 0x1a6   :  { %3589 = vmatprep.subr.bf16.mxu0 %v4615_v7  ;;  %3753 = vmatprep.subr.bf16.mxu1 %v4617_v8  ;;  %v791_v7 = vld [vmem:[#allocation6 + $0xd68] sm:$0xff]  ;;  %v4654_v8 = vcombine.low %v778_v52, %v782_v54  ;;  %v4663_v10 = vcombine.high %v786_v0, %v790_v5  ;;  %v826_v52 = vld [vmem:[#allocation6 + $0xe80] sm:$0xff] }
 0x1a7   :  { %v4665_v11 = vcombine.high %v787_v6, %v791_v7  ;;  %v830_v54 = vld [vmem:[#allocation6 + $0xea0] sm:$0xff]  ;;  %v831_v57 = vld [vmem:[#allocation6 + $0xea8] sm:$0xff] }
 0x1a9   :  { %3590 = vmatpush1.bf16.msra.mxu0 %v4614_v34  ;;  %3754 = vmatpush1.bf16.msra.mxu1 %v4616_v15  ;;  %v799_v34 = vld [vmem:[#allocation6 + $0xda8] sm:$0xff]  ;;  %v4662_v15 = vcombine.low %v786_v0, %v790_v5  ;;  %v834_v0 = vld [vmem:[#allocation6 + $0xec0] sm:$0xff] }
 0x1aa   :  { %3600 = vmatprep.subr.bf16.mxu0 %v4623_v3  ;;  %3764 = vmatprep.subr.bf16.mxu1 %v4625_v16  ;;  %v4664_v3 = vcombine.low %v787_v6, %v791_v7  ;;  %v4671_v16 = vcombine.high %v794_v12, %v798_v13  ;;  %v4673_v17 = vcombine.high %v795_v14, %v799_v34  ;;  %v838_v5 = vld [vmem:[#allocation6 + $0xee0] sm:$0xff]  ;;  %v835_v6 = vld [vmem:[#allocation6 + $0xec8] sm:$0xff] }
 0x1ab   :  { %v839_v7 = vld [vmem:[#allocation6 + $0xee8] sm:$0xff] }
 0x1ac   :  { %3592 = vmatmul.mubr.bf16.vlgmr.msra.gmra.mrb[8].mxu0 %v5085_v22  ;;  %3756 = vmatmul.mubr.bf16.vlgmr.msra.gmra.mrb[8].mxu1 %v5085_v22 }
 0x1ad   :  { %3601 = vmatpush1.bf16.msra.mxu0 %v4622_v23  ;;  %3765 = vmatpush1.bf16.msra.mxu1 %v4624_v56  ;;  %v4670_v23 = vcombine.low %v794_v12, %v798_v13  ;;  %v4672_v56 = vcombine.low %v795_v14, %v799_v34  ;;  %v842_v12 = vld [vmem:[#allocation6 + $0xf00] sm:$0xff]  ;;  %v843_v14 = vld [vmem:[#allocation6 + $0xf08] sm:$0xff] }
 0x1ae   :  { %3602 = vmatprep.subr.bf16.mxu0 %v4631_v24  ;;  %3766 = vmatprep.subr.bf16.mxu1 %v4633_v25  ;;  %v4679_v24 = vcombine.high %v802_v18, %v806_v19  ;;  %v4681_v25 = vcombine.high %v803_v20, %v807_v21  ;;  %v846_v13 = vld [vmem:[#allocation6 + $0xf20] sm:$0xff]  ;;  %v847_v34 = vld [vmem:[#allocation6 + $0xf28] sm:$0xff] }
 0x1af   :  { %3632 = vmatprep.mubr.bf16.mxu0 %v5087_v29  ;;  %3796 = vmatprep.mubr.bf16.mxu1 %v5087_v29 }
 0x1b1   :  { %3603 = vmatpush1.bf16.msra.mxu0 %v4630_v30  ;;  %3767 = vmatpush1.bf16.msra.mxu1 %v4632_v31  ;;  %v4678_v30 = vcombine.low %v802_v18, %v806_v19  ;;  %v4680_v31 = vcombine.low %v803_v20, %v807_v21  ;;  %v850_v18 = vld [vmem:[#allocation6 + $0xf40] sm:$0xff]  ;;  %v851_v20 = vld [vmem:[#allocation6 + $0xf48] sm:$0xff] }
 0x1b2   :  { %3604 = vmatprep.subr.bf16.mxu0 %v4639_v38  ;;  %3768 = vmatprep.subr.bf16.mxu1 %v4641_v40  ;;  %v4687_v38 = vcombine.high %v810_v26, %v814_v27  ;;  %v4689_v40 = vcombine.high %v811_v43, %v815_v28  ;;  %v854_v19 = vld [vmem:[#allocation6 + $0xf60] sm:$0xff]  ;;  %v855_v21 = vld [vmem:[#allocation6 + $0xf68] sm:$0xff] }
 0x1b5   :  { %3605 = vmatpush1.bf16.msra.mxu0 %v4638_v45  ;;  %3769 = vmatpush1.bf16.msra.mxu1 %v4640_v46  ;;  %v4686_v45 = vcombine.low %v810_v26, %v814_v27  ;;  %v4688_v46 = vcombine.low %v811_v43, %v815_v28  ;;  %v4729_v26 = vcombine.high %v851_v20, %v855_v21  ;;  %v858_v27 = vld [vmem:[#allocation6 + $0xf80] sm:$0xff]  ;;  %v859_v28 = vld [vmem:[#allocation6 + $0xf88] sm:$0xff] }
 0x1b6   :  { %3606 = vmatprep.subr.bf16.mxu0 %v4647_v49  ;;  %3770 = vmatprep.subr.bf16.mxu1 %v4649_v51  ;;  %v4695_v49 = vcombine.high %v818_v4, %v822_v41  ;;  %v4697_v51 = vcombine.high %v819_v42, %v823_v44  ;;  %v862_v43 = vld [vmem:[#allocation6 + $0xfa0] sm:$0xff] }
 0x1b9   :  { %3607 = vmatpush1.bf16.msra.mxu0 %v4646_v60  ;;  %3771 = vmatpush1.bf16.msra.mxu1 %v4648_v61  ;;  %v4694_v60 = vcombine.low %v818_v4, %v822_v41  ;;  %v4696_v61 = vcombine.low %v819_v42, %v823_v44  ;;  %v4735_v41 = vcombine.high %v858_v27, %v862_v43  ;;  %v866_v42 = vld [vmem:[#allocation6 + $0xfc0] sm:$0xff] }
 0x1ba   :  { %3608 = vmatprep.subr.bf16.mxu0 %v4655_v62  ;;  %3772 = vmatprep.subr.bf16.mxu1 %v4657_v63  ;;  %v4703_v62 = vcombine.high %v826_v52, %v830_v54  ;;  %v4705_v63 = vcombine.high %v827_v55, %v831_v57  ;;  %v870_v44 = vld [vmem:[#allocation6 + $0xfe0] sm:$0xff] }
 0x1bd   :  { %3609 = vmatpush1.bf16.msra.mxu0 %v4654_v8  ;;  %3773 = vmatpush1.bf16.msra.mxu1 %v4656_v9  ;;  %v4702_v8 = vcombine.low %v826_v52, %v830_v54  ;;  %v4704_v9 = vcombine.low %v827_v55, %v831_v57  ;;  %v4743_v54 = vcombine.high %v866_v42, %v870_v44  ;;  %v364_v57 = vld [vmem:[#allocation6 + $0x10] sm:$0xff] }
 0x1be   :  { %3610 = vmatprep.subr.bf16.mxu0 %v4663_v10  ;;  %3774 = vmatprep.subr.bf16.mxu1 %v4665_v11  ;;  %v4711_v10 = vcombine.high %v834_v0, %v838_v5  ;;  %v4713_v11 = vcombine.high %v835_v6, %v839_v7 }
 0x1c1   :  { %3611 = vmatpush1.bf16.msra.mxu0 %v4662_v15  ;;  %3775 = vmatpush1.bf16.msra.mxu1 %v4664_v3  ;;  %v4710_v15 = vcombine.low %v834_v0, %v838_v5  ;;  %v4712_v3 = vcombine.low %v835_v6, %v839_v7 }
 0x1c2   :  { %3612 = vmatprep.subr.bf16.mxu0 %v4671_v16  ;;  %3776 = vmatprep.subr.bf16.mxu1 %v4673_v17  ;;  %v4719_v16 = vcombine.high %v842_v12, %v846_v13  ;;  %v4721_v17 = vcombine.high %v843_v14, %v847_v34 }
 0x1c5   :  { %3613 = vmatpush1.bf16.msra.mxu0 %v4670_v23  ;;  %3777 = vmatpush1.bf16.msra.mxu1 %v4672_v56  ;;  %v4718_v23 = vcombine.low %v842_v12, %v846_v13  ;;  %v4720_v56 = vcombine.low %v843_v14, %v847_v34 }
 0x1c6   :  { %3614 = vmatprep.subr.bf16.mxu0 %v4679_v24  ;;  %3778 = vmatprep.subr.bf16.mxu1 %v4681_v25  ;;  %v5094_v24 = vsub.s32 6, %v5012_v32  ;;  %v4727_v25 = vcombine.high %v850_v18, %v854_v19 }
 0x1c9   :  { %3615 = vmatpush1.bf16.msra.mxu0 %v4678_v30  ;;  %3779 = vmatpush1.bf16.msra.mxu1 %v4680_v31  ;;  %v863_v30 = vld [vmem:[#allocation6 + $0xfa8] sm:$0xff]  ;;  %v4726_v31 = vcombine.low %v850_v18, %v854_v19 }
 0x1ca   :  { %3616 = vmatprep.subr.bf16.mxu0 %v4687_v38  ;;  %3780 = vmatprep.subr.bf16.mxu1 %v4689_v40  ;;  %v4728_v38 = vcombine.low %v851_v20, %v855_v21  ;;  %v4819_v40 = vld [vmem:[#allocation7] ss:$4 sm:$0xff]  ;;  %v4737_v32 = vcombine.high %v859_v28, %v863_v30 }
 0x1cb   :  { %v108_v4 = vrot.slane %v4819_v40, %v5094_v24  ;;  %v401_v40 = vld [vmem:[#allocation6 + $0x138] sm:$0xff] }
 0x1cd   :  { %3617 = vmatpush1.bf16.msra.mxu0 %v4686_v45  ;;  %3781 = vmatpush1.bf16.msra.mxu1 %v4688_v46  ;;  %v867_v45 = vld [vmem:[#allocation6 + $0xfc8] sm:$0xff]  ;;  %v340_v52 = vadd.f32 %v5049_v50, %v108_v4  ;;  %v373_v50 = vld [vmem:[#allocation6 + $0x58] sm:$0xff] }
 0x1ce   :  { %3618 = vmatprep.subr.bf16.mxu0 %v4695_v49  ;;  %3782 = vmatprep.subr.bf16.mxu1 %v4697_v51  ;;  %v871_v46 = vld [vmem:[#allocation6 + $0xfe8] sm:$0xff]  ;;  %v4734_v49 = vcombine.low %v858_v27, %v862_v43  ;;  %v4736_v51 = vcombine.low %v859_v28, %v863_v30 }
 0x1cf   :  { %v4745_v55 = vcombine.high %v867_v45, %v871_v46  ;;  %v4744_v0 = vcombine.low %v867_v45, %v871_v46  ;;  %v352_v5 = vmax.f32 %v340_v52, 0.0  ;;  %v408_v45 = vld [vmem:[#allocation6 + $0x170] sm:$0xff]  ;;  %v405_v46 = vld [vmem:[#allocation6 + $0x158] sm:$0xff] }
 0x1d1   :  { %3619 = vmatpush1.bf16.msra.mxu0 %v4694_v60  ;;  %3783 = vmatpush1.bf16.msra.mxu1 %v4696_v61  ;;  %v368_v60 = vld [vmem:[#allocation6 + $0x30] sm:$0xff]  ;;  %v365_v61 = vld [vmem:[#allocation6 + $0x18] sm:$0xff]  ;;  %v5098_v12 = vpack.c.bf16 %v352_v5, %v352_v5 }
 0x1d2   :  { %3620 = vmatprep.subr.bf16.mxu0 %v4703_v62  ;;  %3784 = vmatprep.subr.bf16.mxu1 %v4705_v63  ;;  %v369_v62 = vld [vmem:[#allocation6 + $0x38] sm:$0xff]  ;;  %v4742_v63 = vcombine.low %v866_v42, %v870_v44  ;;  %v4243_v6 = vcombine.high %v364_v57, %v368_v60  ;;  %v404_v44 = vld [vmem:[#allocation6 + $0x150] sm:$0xff] }
 0x1d3   :  { %v4245_v7 = vcombine.high %v365_v61, %v369_v62  ;;  %v4244_v13 = vcombine.low %v365_v61, %v369_v62  ;;  %v413_v61 = vld [vmem:[#allocation6 + $0x198] sm:$0xff] }
 0x1d4   :  { %v417_v62 = vld [vmem:[#allocation6 + $0x1b8] sm:$0xff] }
 0x1d5   :  { %3621 = vmatpush1.bf16.msra.mxu0 %v4702_v8  ;;  %3785 = vmatpush1.bf16.msra.mxu1 %v4704_v9  ;;  %v372_v8 = vld [vmem:[#allocation6 + $0x50] sm:$0xff] }
 0x1d6   :  { %3622 = vmatprep.subr.bf16.mxu0 %v4711_v10  ;;  %3786 = vmatprep.subr.bf16.mxu1 %v4713_v11  ;;  %v376_v9 = vld [vmem:[#allocation6 + $0x70] sm:$0xff]  ;;  %v377_v10 = vld [vmem:[#allocation6 + $0x78] sm:$0xff]  ;;  %v4242_v11 = vcombine.low %v364_v57, %v368_v60 }
 0x1d7   :  { %v4251_v14 = vcombine.high %v372_v8, %v376_v9  ;;  %v4253_v34 = vcombine.high %v373_v50, %v377_v10  ;;  %v4250_v18 = vcombine.low %v372_v8, %v376_v9  ;;  %v4252_v19 = vcombine.low %v373_v50, %v377_v10  ;;  %v412_v57 = vld [vmem:[#allocation6 + $0x190] sm:$0xff]  ;;  %v421_v9 = vld [vmem:[#allocation6 + $0x1d8] sm:$0xff] }
 0x1d8   :  { %v416_v60 = vld [vmem:[#allocation6 + $0x1b0] sm:$0xff]  ;;  %v425_v50 = vld [vmem:[#allocation6 + $0x1f8] sm:$0xff] }
 0x1d9   :  { %3623 = vmatpush1.bf16.msra.mxu0 %v4710_v15  ;;  %3787 = vmatpush1.bf16.msra.mxu1 %v4712_v3  ;;  %v380_v15 = vld [vmem:[#allocation6 + $0x90] sm:$0xff]  ;;  %v4291_v5 = vcombine.high %v412_v57, %v416_v60  ;;  %v4290_v10 = vcombine.low %v412_v57, %v416_v60  ;;  %v461_v60 = vld [vmem:[#allocation6 + $0x318] sm:$0xff] }
 0x1da   :  { %3624 = vmatprep.subr.bf16.mxu0 %v4719_v16  ;;  %3788 = vmatprep.subr.bf16.mxu1 %v4721_v17  ;;  %v384_v3 = vld [vmem:[#allocation6 + $0xb0] sm:$0xff]  ;;  %v381_v16 = vld [vmem:[#allocation6 + $0x98] sm:$0xff] }
 0x1db   :  { %v385_v17 = vld [vmem:[#allocation6 + $0xb8] sm:$0xff]  ;;  %v4259_v20 = vcombine.high %v380_v15, %v384_v3  ;;  %v4258_v27 = vcombine.low %v380_v15, %v384_v3  ;;  %v424_v8 = vld [vmem:[#allocation6 + $0x1f0] sm:$0xff] }
 0x1dc   :  { %v4261_v21 = vcombine.high %v381_v16, %v385_v17  ;;  %v4260_v43 = vcombine.low %v381_v16, %v385_v17  ;;  %v432_v15 = vld [vmem:[#allocation6 + $0x230] sm:$0xff]  ;;  %v429_v3 = vld [vmem:[#allocation6 + $0x218] sm:$0xff] }
 0x1dd   :  { %3625 = vmatpush1.bf16.msra.mxu0 %v4718_v23  ;;  %3789 = vmatpush1.bf16.msra.mxu1 %v4720_v56  ;;  %v388_v23 = vld [vmem:[#allocation6 + $0xd0] sm:$0xff]  ;;  %v433_v16 = vld [vmem:[#allocation6 + $0x238] sm:$0xff] }
 0x1de   :  { %3626 = vmatprep.subr.bf16.mxu0 %v4727_v25  ;;  %3790 = vmatprep.subr.bf16.mxu1 %v4729_v26  ;;  %v392_v56 = vld [vmem:[#allocation6 + $0xf0] sm:$0xff]  ;;  %v389_v25 = vld [vmem:[#allocation6 + $0xd8] sm:$0xff] }
 0x1df   :  { %v393_v26 = vld [vmem:[#allocation6 + $0xf8] sm:$0xff]  ;;  %v4267_v28 = vcombine.high %v388_v23, %v392_v56  ;;  %v4266_v4 = vcombine.low %v388_v23, %v392_v56  ;;  %v440_v23 = vld [vmem:[#allocation6 + $0x270] sm:$0xff] }
 0x1e0   :  { %v4269_v30 = vcombine.high %v389_v25, %v393_v26  ;;  %v437_v56 = vld [vmem:[#allocation6 + $0x258] sm:$0xff]  ;;  %v464_v57 = vld [vmem:[#allocation6 + $0x330] sm:$0xff] }
 0x1e1   :  { %3627 = vmatpush1.bf16.msra.mxu0 %v4726_v31  ;;  %3791 = vmatpush1.bf16.msra.mxu1 %v4728_v38  ;;  %v396_v31 = vld [vmem:[#allocation6 + $0x110] sm:$0xff] }
 0x1e2   :  { %3628 = vmatprep.subr.bf16.mxu0 %v4735_v41  ;;  %3792 = vmatprep.subr.bf16.mxu1 %v4737_v32  ;;  %v400_v38 = vld [vmem:[#allocation6 + $0x130] sm:$0xff]  ;;  %v4268_v41 = vcombine.low %v389_v25, %v393_v26  ;;  %v441_v25 = vld [vmem:[#allocation6 + $0x278] sm:$0xff] }
 0x1e3   :  { %v4275_v32 = vcombine.high %v396_v31, %v400_v38 }
 0x1e5   :  { %3629 = vmatpush1.bf16.msra.mxu0 %v4734_v49  ;;  %3793 = vmatpush1.bf16.msra.mxu1 %v4736_v51  ;;  %v409_v49 = vld [vmem:[#allocation6 + $0x178] sm:$0xff]  ;;  %v4274_v51 = vcombine.low %v396_v31, %v400_v38  ;;  %v448_v31 = vld [vmem:[#allocation6 + $0x2b0] sm:$0xff] }
 0x1e6   :  { %3630 = vmatprep.subr.bf16.mxu0 %v4743_v54  ;;  %3794 = vmatprep.subr.bf16.mxu1 %v4745_v55  ;;  %v4283_v54 = vcombine.high %v404_v44, %v408_v45  ;;  %v4285_v55 = vcombine.high %v405_v46, %v409_v49  ;;  %v445_v38 = vld [vmem:[#allocation6 + $0x298] sm:$0xff] }
 0x1e9   :  { %3631 = vmatpush1.bf16.msra.mxu0 %v4742_v63  ;;  %3795 = vmatpush1.bf16.msra.mxu1 %v4744_v0  ;;  %v4282_v63 = vcombine.low %v404_v44, %v408_v45  ;;  %v4284_v0 = vcombine.low %v405_v46, %v409_v49  ;;  %v456_v44 = vld [vmem:[#allocation6 + $0x2f0] sm:$0xff]  ;;  %v453_v45 = vld [vmem:[#allocation6 + $0x2d8] sm:$0xff] }
 0x1ea   :  { %3805 = vmatprep.subr.bf16.mxu0 %v4243_v6  ;;  %3969 = vmatprep.subr.bf16.mxu1 %v4245_v7  ;;  %v4293_v6 = vcombine.high %v413_v61, %v417_v62  ;;  %v420_v7 = vld [vmem:[#allocation6 + $0x1d0] sm:$0xff]  ;;  %v457_v46 = vld [vmem:[#allocation6 + $0x2f8] sm:$0xff] }
 0x1eb   :  { %v4298_v17 = vcombine.low %v420_v7, %v424_v8 }
 0x1ec   :  { %3633 = vmatmul.mubr.bf16.vlgmr.msra.gmra.mrb[8].mxu0 %v5098_v12  ;;  %3797 = vmatmul.mubr.bf16.vlgmr.msra.gmra.mrb[8].mxu1 %v5098_v12 }
 0x1ed   :  { %3806 = vmatpush1.bf16.msra.mxu0 %v4242_v11  ;;  %3837 = vmatprep.mubr.bf16.mxu0 %v5033_v58  ;;  %v4292_v11 = vcombine.low %v413_v61, %v417_v62  ;;  %v465_v61 = vld [vmem:[#allocation6 + $0x338] sm:$0xff] }
 0x1ee   :  { %3970 = vmatpush1.bf16.msra.mxu1 %v4244_v13  ;;  %4001 = vmatprep.mubr.bf16.mxu1 %v5033_v58  ;;  %v397_v58 = vld [vmem:[#allocation6 + $0x118] sm:$0xff]  ;;  %v4299_v13 = vcombine.high %v420_v7, %v424_v8  ;;  %v472_v7 = vld [vmem:[#allocation6 + $0x370] sm:$0xff] }
 0x1ef   :  { %3807 = vmatprep.subr.bf16.mxu0 %v4251_v14  ;;  %3971 = vmatprep.subr.bf16.mxu1 %v4253_v34  ;;  %v4277_v42 = vcombine.high %v397_v58, %v401_v40  ;;  %v4276_v52 = vcombine.low %v397_v58, %v401_v40  ;;  %v4301_v14 = vcombine.high %v421_v9, %v425_v50  ;;  %v428_v34 = vld [vmem:[#allocation6 + $0x210] sm:$0xff]  ;;  %v449_v58 = vld [vmem:[#allocation6 + $0x2b8] sm:$0xff] }
 0x1f0   :  { %v4306_v26 = vcombine.low %v428_v34, %v432_v15  ;;  %v469_v8 = vld [vmem:[#allocation6 + $0x358] sm:$0xff] }
 0x1f1   :  { %3808 = vmatpush1.bf16.msra.mxu0 %v4250_v18  ;;  %v4300_v18 = vcombine.low %v421_v9, %v425_v50  ;;  %v473_v9 = vld [vmem:[#allocation6 + $0x378] sm:$0xff] }
 0x1f2   :  { %3972 = vmatpush1.bf16.msra.mxu1 %v4252_v19  ;;  %3809 = vmatprep.subr.bf16.mxu0 %v4259_v20  ;;  %v4307_v19 = vcombine.high %v428_v34, %v432_v15  ;;  %v4309_v20 = vcombine.high %v429_v3, %v433_v16  ;;  %v480_v34 = vld [vmem:[#allocation6 + $0x3b0] sm:$0xff]  ;;  %v477_v15 = vld [vmem:[#allocation6 + $0x398] sm:$0xff] }
 0x1f3   :  { %3973 = vmatprep.subr.bf16.mxu1 %v4261_v21  ;;  %v436_v21 = vld [vmem:[#allocation6 + $0x250] sm:$0xff] }
 0x1f4   :  { %v4314_v40 = vcombine.low %v436_v21, %v440_v23 }
 0x1f5   :  { %3810 = vmatpush1.bf16.msra.mxu0 %v4258_v27  ;;  %v4308_v27 = vcombine.low %v429_v3, %v433_v16  ;;  %v481_v3 = vld [vmem:[#allocation6 + $0x3b8] sm:$0xff] }
 0x1f6   :  { %3974 = vmatpush1.bf16.msra.mxu1 %v4260_v43  ;;  %3811 = vmatprep.subr.bf16.mxu0 %v4267_v28  ;;  %v4315_v43 = vcombine.high %v436_v21, %v440_v23  ;;  %v4317_v28 = vcombine.high %v437_v56, %v441_v25  ;;  %v488_v21 = vld [vmem:[#allocation6 + $0x3f0] sm:$0xff]  ;;  %v485_v23 = vld [vmem:[#allocation6 + $0x3d8] sm:$0xff] }
 0x1f7   :  { %3975 = vmatprep.subr.bf16.mxu1 %v4269_v30  ;;  %v444_v30 = vld [vmem:[#allocation6 + $0x290] sm:$0xff] }
 0x1f8   :  { %v4322_v49 = vcombine.low %v444_v30, %v448_v31 }
 0x1f9   :  { %3812 = vmatpush1.bf16.msra.mxu0 %v4266_v4  ;;  %v4316_v4 = vcombine.low %v437_v56, %v441_v25  ;;  %v489_v56 = vld [vmem:[#allocation6 + $0x3f8] sm:$0xff] }
 0x1fa   :  { %3976 = vmatpush1.bf16.msra.mxu1 %v4268_v41  ;;  %3813 = vmatprep.subr.bf16.mxu0 %v4275_v32  ;;  %v4323_v41 = vcombine.high %v444_v30, %v448_v31  ;;  %v4325_v32 = vcombine.high %v445_v38, %v449_v58  ;;  %v496_v30 = vld [vmem:[#allocation6 + $0x430] sm:$0xff]  ;;  %v493_v31 = vld [vmem:[#allocation6 + $0x418] sm:$0xff] }
 0x1fb   :  { %3977 = vmatprep.subr.bf16.mxu1 %v4277_v42  ;;  %v452_v42 = vld [vmem:[#allocation6 + $0x2d0] sm:$0xff] }
 0x1fc   :  { %v4330_v62 = vcombine.low %v452_v42, %v456_v44 }
 0x1fd   :  { %3814 = vmatpush1.bf16.msra.mxu0 %v4274_v51  ;;  %v4324_v51 = vcombine.low %v445_v38, %v449_v58  ;;  %v497_v38 = vld [vmem:[#allocation6 + $0x438] sm:$0xff] }
 0x1fe   :  { %3978 = vmatpush1.bf16.msra.mxu1 %v4276_v52  ;;  %3815 = vmatprep.subr.bf16.mxu0 %v4283_v54  ;;  %v4331_v52 = vcombine.high %v452_v42, %v456_v44  ;;  %v4333_v54 = vcombine.high %v453_v45, %v457_v46  ;;  %v504_v42 = vld [vmem:[#allocation6 + $0x470] sm:$0xff] }
 0x1ff   :  { %3979 = vmatprep.subr.bf16.mxu1 %v4285_v55  ;;  %v460_v55 = vld [vmem:[#allocation6 + $0x310] sm:$0xff] }
 0x200   :  { %v4338_v50 = vcombine.low %v460_v55, %v464_v57 }
 0x201   :  { %3816 = vmatpush1.bf16.msra.mxu0 %v4282_v63  ;;  %v4332_v63 = vcombine.low %v453_v45, %v457_v46  ;;  %v501_v45 = vld [vmem:[#allocation6 + $0x458] sm:$0xff] }
 0x202   :  { %3980 = vmatpush1.bf16.msra.mxu1 %v4284_v0  ;;  %3817 = vmatprep.subr.bf16.mxu0 %v4291_v5  ;;  %v4339_v0 = vcombine.high %v460_v55, %v464_v57  ;;  %v4341_v5 = vcombine.high %v461_v60, %v465_v61  ;;  %v505_v46 = vld [vmem:[#allocation6 + $0x478] sm:$0xff] }
 0x203   :  { %3981 = vmatprep.subr.bf16.mxu1 %v4293_v6  ;;  %v468_v6 = vld [vmem:[#allocation6 + $0x350] sm:$0xff]  ;;  %v4381_v55 = vcombine.high %v501_v45, %v505_v46  ;;  %v509_v57 = vld [vmem:[#allocation6 + $0x498] sm:$0xff] }
 0x204   :  { %v4346_v16 = vcombine.low %v468_v6, %v472_v7 }
 0x205   :  { %3818 = vmatpush1.bf16.msra.mxu0 %v4290_v10  ;;  %v4340_v10 = vcombine.low %v461_v60, %v465_v61  ;;  %v513_v60 = vld [vmem:[#allocation6 + $0x4b8] sm:$0xff] }
 0x206   :  { %3982 = vmatpush1.bf16.msra.mxu1 %v4292_v11  ;;  %3819 = vmatprep.subr.bf16.mxu0 %v4299_v13  ;;  %v4347_v11 = vcombine.high %v468_v6, %v472_v7  ;;  %v4349_v13 = vcombine.high %v469_v8, %v473_v9  ;;  %v520_v6 = vld [vmem:[#allocation6 + $0x4f0] sm:$0xff]  ;;  %v517_v7 = vld [vmem:[#allocation6 + $0x4d8] sm:$0xff] }
 0x207   :  { %3983 = vmatprep.subr.bf16.mxu1 %v4301_v14  ;;  %v476_v14 = vld [vmem:[#allocation6 + $0x390] sm:$0xff] }
 0x208   :  { %v4354_v25 = vcombine.low %v476_v14, %v480_v34 }
 0x209   :  { %3820 = vmatpush1.bf16.msra.mxu0 %v4298_v17  ;;  %v4348_v17 = vcombine.low %v469_v8, %v473_v9  ;;  %v521_v8 = vld [vmem:[#allocation6 + $0x4f8] sm:$0xff] }
 0x20a   :  { %3984 = vmatpush1.bf16.msra.mxu1 %v4300_v18  ;;  %3821 = vmatprep.subr.bf16.mxu0 %v4307_v19  ;;  %v4355_v18 = vcombine.high %v476_v14, %v480_v34  ;;  %v4357_v19 = vcombine.high %v477_v15, %v481_v3  ;;  %v525_v14 = vld [vmem:[#allocation6 + $0x518] sm:$0xff] }
 0x20b   :  { %3985 = vmatprep.subr.bf16.mxu1 %v4309_v20  ;;  %v484_v20 = vld [vmem:[#allocation6 + $0x3d0] sm:$0xff]  ;;  %v529_v34 = vld [vmem:[#allocation6 + $0x538] sm:$0xff] }
 0x20c   :  { %v4362_v58 = vcombine.low %v484_v20, %v488_v21 }
 0x20d   :  { %3822 = vmatpush1.bf16.msra.mxu0 %v4306_v26  ;;  %v4356_v26 = vcombine.low %v477_v15, %v481_v3  ;;  %v4396_v15 = vcombine.low %v517_v7, %v521_v8 }
 0x20e   :  { %3986 = vmatpush1.bf16.msra.mxu1 %v4308_v27  ;;  %3823 = vmatprep.subr.bf16.mxu0 %v4315_v43  ;;  %v4363_v27 = vcombine.high %v484_v20, %v488_v21  ;;  %v4365_v43 = vcombine.high %v485_v23, %v489_v56  ;;  %v537_v20 = vld [vmem:[#allocation6 + $0x578] sm:$0xff] }
 0x20f   :  { %3987 = vmatprep.subr.bf16.mxu1 %v4317_v28  ;;  %v492_v28 = vld [vmem:[#allocation6 + $0x410] sm:$0xff] }
 0x210   :  { %v4370_v44 = vcombine.low %v492_v28, %v496_v30 }
 0x211   :  { %3824 = vmatpush1.bf16.msra.mxu0 %v4314_v40  ;;  %v4364_v40 = vcombine.low %v485_v23, %v489_v56  ;;  %v4404_v23 = vcombine.low %v525_v14, %v529_v34 }
 0x212   :  { %3988 = vmatpush1.bf16.msra.mxu1 %v4316_v4  ;;  %3825 = vmatprep.subr.bf16.mxu0 %v4323_v41  ;;  %v4371_v4 = vcombine.high %v492_v28, %v496_v30  ;;  %v4373_v41 = vcombine.high %v493_v31, %v497_v38  ;;  %v545_v28 = vld [vmem:[#allocation6 + $0x5b8] sm:$0xff] }
 0x213   :  { %3989 = vmatprep.subr.bf16.mxu1 %v4325_v32  ;;  %v500_v32 = vld [vmem:[#allocation6 + $0x450] sm:$0xff] }
 0x214   :  { %v4378_v61 = vcombine.low %v500_v32, %v504_v42 }
 0x215   :  { %3826 = vmatpush1.bf16.msra.mxu0 %v4322_v49  ;;  %v4372_v49 = vcombine.low %v493_v31, %v497_v38 }
 0x216   :  { %3990 = vmatpush1.bf16.msra.mxu1 %v4324_v51  ;;  %3827 = vmatprep.subr.bf16.mxu0 %v4331_v52  ;;  %v4379_v51 = vcombine.high %v500_v32, %v504_v42  ;;  %v508_v52 = vld [vmem:[#allocation6 + $0x490] sm:$0xff]  ;;  %v553_v32 = vld [vmem:[#allocation6 + $0x5f8] sm:$0xff] }
 0x217   :  { %3991 = vmatprep.subr.bf16.mxu1 %v4333_v54  ;;  %v512_v54 = vld [vmem:[#allocation6 + $0x4b0] sm:$0xff] }
 0x218   :  { %v4386_v9 = vcombine.low %v508_v52, %v512_v54 }
 0x219   :  { %3828 = vmatpush1.bf16.msra.mxu0 %v4330_v62  ;;  %v4380_v62 = vcombine.low %v501_v45, %v505_v46 }
 0x21a   :  { %3992 = vmatpush1.bf16.msra.mxu1 %v4332_v63  ;;  %3829 = vmatprep.subr.bf16.mxu0 %v4339_v0  ;;  %v4387_v63 = vcombine.high %v508_v52, %v512_v54  ;;  %v4389_v0 = vcombine.high %v509_v57, %v513_v60  ;;  %v557_v52 = vld [vmem:[#allocation6 + $0x618] sm:$0xff] }
 0x21b   :  { %3993 = vmatprep.subr.bf16.mxu1 %v4341_v5  ;;  %v516_v5 = vld [vmem:[#allocation6 + $0x4d0] sm:$0xff]  ;;  %v561_v54 = vld [vmem:[#allocation6 + $0x638] sm:$0xff] }
 0x21d   :  { %3830 = vmatpush1.bf16.msra.mxu0 %v4338_v50  ;;  %v4395_v50 = vcombine.high %v516_v5, %v520_v6 }
 0x21e   :  { %3994 = vmatpush1.bf16.msra.mxu1 %v4340_v10  ;;  %3831 = vmatprep.subr.bf16.mxu0 %v4347_v11  ;;  %v4397_v10 = vcombine.high %v517_v7, %v521_v8  ;;  %v524_v11 = vld [vmem:[#allocation6 + $0x510] sm:$0xff]  ;;  %v4436_v7 = vcombine.low %v557_v52, %v561_v54 }
 0x21f   :  { %3995 = vmatprep.subr.bf16.mxu1 %v4349_v13  ;;  %v528_v13 = vld [vmem:[#allocation6 + $0x530] sm:$0xff] }
 0x220   :  { %v4403_v3 = vcombine.high %v524_v11, %v528_v13  ;;  %v4402_v21 = vcombine.low %v524_v11, %v528_v13  ;;  %v577_v11 = vld [vmem:[#allocation6 + $0x6b8] sm:$0xff] }
 0x221   :  { %3832 = vmatpush1.bf16.msra.mxu0 %v4346_v16  ;;  %v4405_v16 = vcombine.high %v525_v14, %v529_v34 }
 0x222   :  { %3996 = vmatpush1.bf16.msra.mxu1 %v4348_v17  ;;  %3833 = vmatprep.subr.bf16.mxu0 %v4355_v18  ;;  %v532_v17 = vld [vmem:[#allocation6 + $0x550] sm:$0xff] }
 0x223   :  { %3997 = vmatprep.subr.bf16.mxu1 %v4357_v19  ;;  %v536_v18 = vld [vmem:[#allocation6 + $0x570] sm:$0xff]  ;;  %v533_v19 = vld [vmem:[#allocation6 + $0x558] sm:$0xff] }
 0x224   :  { %v4411_v56 = vcombine.high %v532_v17, %v536_v18  ;;  %v4410_v30 = vcombine.low %v532_v17, %v536_v18  ;;  %v4412_v31 = vcombine.low %v533_v19, %v537_v20  ;;  %v585_v17 = vld [vmem:[#allocation6 + $0x6f8] sm:$0xff] }
 0x225   :  { %3834 = vmatpush1.bf16.msra.mxu0 %v4354_v25  ;;  %v4413_v25 = vcombine.high %v533_v19, %v537_v20 }
 0x226   :  { %3998 = vmatpush1.bf16.msra.mxu1 %v4356_v26  ;;  %3835 = vmatprep.subr.bf16.mxu0 %v4363_v27  ;;  %v540_v26 = vld [vmem:[#allocation6 + $0x590] sm:$0xff] }
 0x227   :  { %3999 = vmatprep.subr.bf16.mxu1 %v4365_v43  ;;  %v544_v27 = vld [vmem:[#allocation6 + $0x5b0] sm:$0xff]  ;;  %v541_v43 = vld [vmem:[#allocation6 + $0x598] sm:$0xff] }
 0x228   :  { %v4419_v38 = vcombine.high %v540_v26, %v544_v27  ;;  %v4418_v42 = vcombine.low %v540_v26, %v544_v27  ;;  %v593_v26 = vld [vmem:[#allocation6 + $0x738] sm:$0xff] }
 0x229   :  { %3836 = vmatpush1.bf16.msra.mxu0 %v4362_v58  ;;  %v4421_v58 = vcombine.high %v541_v43, %v545_v28 }
 0x22a   :  { %4000 = vmatpush1.bf16.msra.mxu1 %v4364_v40  ;;  %3846 = vmatprep.subr.bf16.mxu0 %v4371_v4  ;;  %v548_v40 = vld [vmem:[#allocation6 + $0x5d0] sm:$0xff] }
 0x22b   :  { %4010 = vmatprep.subr.bf16.mxu1 %v4373_v41  ;;  %v552_v4 = vld [vmem:[#allocation6 + $0x5f0] sm:$0xff]  ;;  %v549_v41 = vld [vmem:[#allocation6 + $0x5d8] sm:$0xff] }
 0x22c   :  { %3838 = vmatmul.mubr.bf16.vlgmr.msra.gmra.mrb[12].mxu0 %v5035_v59  ;;  %v4427_v45 = vcombine.high %v548_v40, %v552_v4  ;;  %v4429_v46 = vcombine.high %v549_v41, %v553_v32 }
 0x22d   :  { %4002 = vmatmul.mubr.bf16.vlgmr.msra.gmra.mrb[12].mxu1 %v5035_v59  ;;  %3847 = vmatpush1.bf16.msra.mxu0 %v4370_v44  ;;  %v4388_v59 = vcombine.low %v509_v57, %v513_v60  ;;  %v4420_v44 = vcombine.low %v541_v43, %v545_v28  ;;  %v4428_v57 = vcombine.low %v549_v41, %v553_v32 }
 0x22e   :  { %3878 = vmatprep.mubr.bf16.mxu0 %v5039_v2  ;;  %4011 = vmatpush1.bf16.msra.mxu1 %v4372_v49  ;;  %v556_v49 = vld [vmem:[#allocation6 + $0x610] sm:$0xff] }
 0x22f   :  { %4042 = vmatprep.mubr.bf16.mxu1 %v5039_v2  ;;  %3848 = vmatprep.subr.bf16.mxu0 %v4379_v51  ;;  %v4394_v2 = vcombine.low %v516_v5, %v520_v6  ;;  %v560_v51 = vld [vmem:[#allocation6 + $0x630] sm:$0xff]  ;;  %v569_v5 = vld [vmem:[#allocation6 + $0x678] sm:$0xff] }
 0x230   :  { %4012 = vmatprep.subr.bf16.mxu1 %v4381_v55  ;;  %v4426_v55 = vcombine.low %v548_v40, %v552_v4  ;;  %v4435_v60 = vcombine.high %v556_v49, %v560_v51  ;;  %v4434_v6 = vcombine.low %v556_v49, %v560_v51  ;;  %v601_v40 = vld [vmem:[#allocation6 + $0x778] sm:$0xff] }
 0x231   :  { %3849 = vmatpush1.bf16.msra.mxu0 %v4378_v61  ;;  %v4437_v61 = vcombine.high %v557_v52, %v561_v54  ;;  %v609_v49 = vld [vmem:[#allocation6 + $0x7b8] sm:$0xff] }
 0x232   :  { %4013 = vmatpush1.bf16.msra.mxu1 %v4380_v62  ;;  %3850 = vmatprep.subr.bf16.mxu0 %v4387_v63  ;;  %v564_v62 = vld [vmem:[#allocation6 + $0x650] sm:$0xff] }
 0x233   :  { %4014 = vmatprep.subr.bf16.mxu1 %v4389_v0  ;;  %v568_v63 = vld [vmem:[#allocation6 + $0x670] sm:$0xff]  ;;  %v565_v0 = vld [vmem:[#allocation6 + $0x658] sm:$0xff] }
 0x234   :  { %v4443_v8 = vcombine.high %v564_v62, %v568_v63  ;;  %v4442_v13 = vcombine.low %v564_v62, %v568_v63  ;;  %v4444_v14 = vcombine.low %v565_v0, %v569_v5  ;;  %v617_v62 = vld [vmem:[#allocation6 + $0x7f8] sm:$0xff] }
 0x235   :  { %3851 = vmatpush1.bf16.msra.mxu0 %v4386_v9  ;;  %v4445_v9 = vcombine.high %v565_v0, %v569_v5 }
 0x236   :  { %4015 = vmatpush1.bf16.msra.mxu1 %v4388_v59  ;;  %3852 = vmatprep.subr.bf16.mxu0 %v4395_v50  ;;  %v572_v59 = vld [vmem:[#allocation6 + $0x690] sm:$0xff] }
 0x237   :  { %4016 = vmatprep.subr.bf16.mxu1 %v4397_v10  ;;  %v576_v50 = vld [vmem:[#allocation6 + $0x6b0] sm:$0xff]  ;;  %v573_v10 = vld [vmem:[#allocation6 + $0x698] sm:$0xff] }
 0x238   :  { %v4451_v34 = vcombine.high %v572_v59, %v576_v50  ;;  %v4450_v18 = vcombine.low %v572_v59, %v576_v50  ;;  %v4452_v19 = vcombine.low %v573_v10, %v577_v11  ;;  %v625_v59 = vld [vmem:[#allocation6 + $0x838] sm:$0xff] }
 0x239   :  { %3853 = vmatpush1.bf16.msra.mxu0 %v4394_v2  ;;  %v4453_v2 = vcombine.high %v573_v10, %v577_v11 }
 0x23a   :  { %4017 = vmatpush1.bf16.msra.mxu1 %v4396_v15  ;;  %3854 = vmatprep.subr.bf16.mxu0 %v4403_v3  ;;  %v580_v15 = vld [vmem:[#allocation6 + $0x6d0] sm:$0xff] }
 0x23b   :  { %4018 = vmatprep.subr.bf16.mxu1 %v4405_v16  ;;  %v584_v3 = vld [vmem:[#allocation6 + $0x6f0] sm:$0xff]  ;;  %v581_v16 = vld [vmem:[#allocation6 + $0x6d8] sm:$0xff] }
 0x23c   :  { %v4459_v20 = vcombine.high %v580_v15, %v584_v3  ;;  %v4458_v27 = vcombine.low %v580_v15, %v584_v3  ;;  %v4460_v43 = vcombine.low %v581_v16, %v585_v17  ;;  %v629_v15 = vld [vmem:[#allocation6 + $0x858] sm:$0xff] }
 0x23d   :  { %3855 = vmatpush1.bf16.msra.mxu0 %v4402_v21  ;;  %v4461_v21 = vcombine.high %v581_v16, %v585_v17  ;;  %v633_v3 = vld [vmem:[#allocation6 + $0x878] sm:$0xff] }
 0x23e   :  { %4019 = vmatpush1.bf16.msra.mxu1 %v4404_v23  ;;  %3856 = vmatprep.subr.bf16.mxu0 %v4411_v56  ;;  %v588_v23 = vld [vmem:[#allocation6 + $0x710] sm:$0xff] }
 0x23f   :  { %4020 = vmatprep.subr.bf16.mxu1 %v4413_v25  ;;  %v592_v56 = vld [vmem:[#allocation6 + $0x730] sm:$0xff]  ;;  %v589_v25 = vld [vmem:[#allocation6 + $0x718] sm:$0xff] }
 0x240   :  { %v4467_v28 = vcombine.high %v588_v23, %v592_v56  ;;  %v4466_v4 = vcombine.low %v588_v23, %v592_v56  ;;  %v4468_v41 = vcombine.low %v589_v25, %v593_v26  ;;  %v641_v23 = vld [vmem:[#allocation6 + $0x8b8] sm:$0xff] }
 0x241   :  { %3857 = vmatpush1.bf16.msra.mxu0 %v4410_v30  ;;  %v4469_v30 = vcombine.high %v589_v25, %v593_v26  ;;  %v4508_v25 = vcombine.low %v629_v15, %v633_v3 }
 0x242   :  { %4021 = vmatpush1.bf16.msra.mxu1 %v4412_v31  ;;  %3858 = vmatprep.subr.bf16.mxu0 %v4419_v38  ;;  %v596_v31 = vld [vmem:[#allocation6 + $0x750] sm:$0xff] }
 0x243   :  { %4022 = vmatprep.subr.bf16.mxu1 %v4421_v58  ;;  %v600_v38 = vld [vmem:[#allocation6 + $0x770] sm:$0xff]  ;;  %v597_v58 = vld [vmem:[#allocation6 + $0x758] sm:$0xff] }
 0x244   :  { %v4475_v32 = vcombine.high %v596_v31, %v600_v38  ;;  %v4474_v51 = vcombine.low %v596_v31, %v600_v38  ;;  %v4476_v52 = vcombine.low %v597_v58, %v601_v40  ;;  %v649_v31 = vld [vmem:[#allocation6 + $0x8f8] sm:$0xff] }
 0x245   :  { %3859 = vmatpush1.bf16.msra.mxu0 %v4418_v42  ;;  %v4477_v42 = vcombine.high %v597_v58, %v601_v40 }
 0x246   :  { %4023 = vmatpush1.bf16.msra.mxu1 %v4420_v44  ;;  %3860 = vmatprep.subr.bf16.mxu0 %v4427_v45  ;;  %v604_v44 = vld [vmem:[#allocation6 + $0x790] sm:$0xff] }
 0x247   :  { %4024 = vmatprep.subr.bf16.mxu1 %v4429_v46  ;;  %v608_v45 = vld [vmem:[#allocation6 + $0x7b0] sm:$0xff]  ;;  %v605_v46 = vld [vmem:[#allocation6 + $0x798] sm:$0xff] }
 0x248   :  { %v4483_v54 = vcombine.high %v604_v44, %v608_v45  ;;  %v4482_v63 = vcombine.low %v604_v44, %v608_v45  ;;  %v4484_v0 = vcombine.low %v605_v46, %v609_v49 }
 0x249   :  { %3861 = vmatpush1.bf16.msra.mxu0 %v4426_v55  ;;  %v4485_v55 = vcombine.high %v605_v46, %v609_v49  ;;  %v660_v49 = vld [vmem:[#allocation6 + $0x950] sm:$0xff] }
 0x24a   :  { %4025 = vmatpush1.bf16.msra.mxu1 %v4428_v57  ;;  %3862 = vmatprep.subr.bf16.mxu0 %v4435_v60  ;;  %v612_v57 = vld [vmem:[#allocation6 + $0x7d0] sm:$0xff] }
 0x24b   :  { %4026 = vmatprep.subr.bf16.mxu1 %v4437_v61  ;;  %v616_v60 = vld [vmem:[#allocation6 + $0x7f0] sm:$0xff]  ;;  %v613_v61 = vld [vmem:[#allocation6 + $0x7d8] sm:$0xff] }
 0x24c   :  { %v4491_v5 = vcombine.high %v612_v57, %v616_v60  ;;  %v4490_v50 = vcombine.low %v612_v57, %v616_v60  ;;  %v4492_v10 = vcombine.low %v613_v61, %v617_v62 }
 0x24d   :  { %3863 = vmatpush1.bf16.msra.mxu0 %v4434_v6  ;;  %v4493_v6 = vcombine.high %v613_v61, %v617_v62  ;;  %v668_v62 = vld [vmem:[#allocation6 + $0x990] sm:$0xff] }
 0x24e   :  { %4027 = vmatpush1.bf16.msra.mxu1 %v4436_v7  ;;  %3864 = vmatprep.subr.bf16.mxu0 %v4443_v8  ;;  %v620_v7 = vld [vmem:[#allocation6 + $0x810] sm:$0xff] }
 0x24f   :  { %4028 = vmatprep.subr.bf16.mxu1 %v4445_v9  ;;  %v624_v8 = vld [vmem:[#allocation6 + $0x830] sm:$0xff]  ;;  %v621_v9 = vld [vmem:[#allocation6 + $0x818] sm:$0xff] }
 0x250   :  { %v4499_v11 = vcombine.high %v620_v7, %v624_v8  ;;  %v4500_v16 = vcombine.low %v621_v9, %v625_v59 }
 0x251   :  { %3865 = vmatpush1.bf16.msra.mxu0 %v4442_v13  ;;  %v4501_v13 = vcombine.high %v621_v9, %v625_v59  ;;  %v676_v59 = vld [vmem:[#allocation6 + $0x9d0] sm:$0xff] }
 0x252   :  { %4029 = vmatpush1.bf16.msra.mxu1 %v4444_v14  ;;  %3866 = vmatprep.subr.bf16.mxu0 %v4451_v34  ;;  %v628_v14 = vld [vmem:[#allocation6 + $0x850] sm:$0xff] }
 0x253   :  { %4030 = vmatprep.subr.bf16.mxu1 %v4453_v2  ;;  %v632_v34 = vld [vmem:[#allocation6 + $0x870] sm:$0xff]  ;;  %v4498_v2 = vcombine.low %v620_v7, %v624_v8 }
 0x254   :  { %v4507_v17 = vcombine.high %v628_v14, %v632_v34  ;;  %v4506_v56 = vcombine.low %v628_v14, %v632_v34 }
 0x255   :  { %3867 = vmatpush1.bf16.msra.mxu0 %v4450_v18  ;;  %v636_v18 = vld [vmem:[#allocation6 + $0x890] sm:$0xff] }
 0x256   :  { %4031 = vmatpush1.bf16.msra.mxu1 %v4452_v19  ;;  %3868 = vmatprep.subr.bf16.mxu0 %v4459_v20  ;;  %v640_v19 = vld [vmem:[#allocation6 + $0x8b0] sm:$0xff]  ;;  %v4509_v20 = vcombine.high %v629_v15, %v633_v3 }
 0x257   :  { %4032 = vmatprep.subr.bf16.mxu1 %v4461_v21  ;;  %v637_v21 = vld [vmem:[#allocation6 + $0x898] sm:$0xff]  ;;  %v4515_v26 = vcombine.high %v636_v18, %v640_v19  ;;  %v4514_v38 = vcombine.low %v636_v18, %v640_v19  ;;  %v684_v15 = vld [vmem:[#allocation6 + $0xa10] sm:$0xff] }
 0x258   :  { %v688_v3 = vld [vmem:[#allocation6 + $0xa30] sm:$0xff] }
 0x259   :  { %3869 = vmatpush1.bf16.msra.mxu0 %v4458_v27  ;;  %v4517_v27 = vcombine.high %v637_v21, %v641_v23 }
 0x25a   :  { %4033 = vmatpush1.bf16.msra.mxu1 %v4460_v43  ;;  %3870 = vmatprep.subr.bf16.mxu0 %v4467_v28  ;;  %v644_v43 = vld [vmem:[#allocation6 + $0x8d0] sm:$0xff] }
 0x25b   :  { %4034 = vmatprep.subr.bf16.mxu1 %v4469_v30  ;;  %v648_v28 = vld [vmem:[#allocation6 + $0x8f0] sm:$0xff]  ;;  %v645_v30 = vld [vmem:[#allocation6 + $0x8d8] sm:$0xff] }
 0x25c   :  { %v4523_v58 = vcombine.high %v644_v43, %v648_v28  ;;  %v4525_v40 = vcombine.high %v645_v30, %v649_v31  ;;  %v4524_v44 = vcombine.low %v645_v30, %v649_v31  ;;  %v700_v31 = vld [vmem:[#allocation6 + $0xa90] sm:$0xff] }
 0x25d   :  { %3871 = vmatpush1.bf16.msra.mxu0 %v4466_v4  ;;  %v652_v4 = vld [vmem:[#allocation6 + $0x910] sm:$0xff] }
 0x25e   :  { %4035 = vmatpush1.bf16.msra.mxu1 %v4468_v41  ;;  %3872 = vmatprep.subr.bf16.mxu0 %v4475_v32  ;;  %v656_v41 = vld [vmem:[#allocation6 + $0x930] sm:$0xff]  ;;  %v653_v32 = vld [vmem:[#allocation6 + $0x918] sm:$0xff] }
 0x25f   :  { %4036 = vmatprep.subr.bf16.mxu1 %v4477_v42  ;;  %v657_v42 = vld [vmem:[#allocation6 + $0x938] sm:$0xff]  ;;  %v4531_v45 = vcombine.high %v652_v4, %v656_v41 }
 0x260   :  { %v4533_v46 = vcombine.high %v653_v32, %v657_v42  ;;  %v4532_v57 = vcombine.low %v653_v32, %v657_v42  ;;  %v708_v42 = vld [vmem:[#allocation6 + $0xad0] sm:$0xff] }
 0x261   :  { %3873 = vmatpush1.bf16.msra.mxu0 %v4474_v51  ;;  %v664_v51 = vld [vmem:[#allocation6 + $0x970] sm:$0xff] }
 0x262   :  { %4037 = vmatpush1.bf16.msra.mxu1 %v4476_v52  ;;  %3874 = vmatprep.subr.bf16.mxu0 %v4483_v54  ;;  %v661_v52 = vld [vmem:[#allocation6 + $0x958] sm:$0xff]  ;;  %v4539_v60 = vcombine.high %v660_v49, %v664_v51 }
 0x263   :  { %4038 = vmatprep.subr.bf16.mxu1 %v4485_v55  ;;  %v665_v54 = vld [vmem:[#allocation6 + $0x978] sm:$0xff]  ;;  %v4530_v55 = vcombine.low %v652_v4, %v656_v41 }
 0x264   :  { %v4541_v61 = vcombine.high %v661_v52, %v665_v54  ;;  %v4540_v7 = vcombine.low %v661_v52, %v665_v54  ;;  %v716_v54 = vld [vmem:[#allocation6 + $0xb10] sm:$0xff] }
 0x265   :  { %3875 = vmatpush1.bf16.msra.mxu0 %v4482_v63  ;;  %v672_v63 = vld [vmem:[#allocation6 + $0x9b0] sm:$0xff] }
 0x266   :  { %4039 = vmatpush1.bf16.msra.mxu1 %v4484_v0  ;;  %3876 = vmatprep.subr.bf16.mxu0 %v4491_v5  ;;  %v669_v0 = vld [vmem:[#allocation6 + $0x998] sm:$0xff]  ;;  %v4547_v8 = vcombine.high %v668_v62, %v672_v63 }
 0x267   :  { %4040 = vmatprep.subr.bf16.mxu1 %v4493_v6  ;;  %v673_v5 = vld [vmem:[#allocation6 + $0x9b8] sm:$0xff]  ;;  %v4538_v6 = vcombine.low %v660_v49, %v664_v51 }
 0x268   :  { %v4549_v9 = vcombine.high %v669_v0, %v673_v5  ;;  %v4548_v14 = vcombine.low %v669_v0, %v673_v5  ;;  %v724_v5 = vld [vmem:[#allocation6 + $0xb50] sm:$0xff] }
 0x269   :  { %3877 = vmatpush1.bf16.msra.mxu0 %v4490_v50  ;;  %v680_v50 = vld [vmem:[#allocation6 + $0x9f0] sm:$0xff] }
 0x26a   :  { %4041 = vmatpush1.bf16.msra.mxu1 %v4492_v10  ;;  %3887 = vmatprep.subr.bf16.mxu0 %v4499_v11  ;;  %v677_v10 = vld [vmem:[#allocation6 + $0x9d8] sm:$0xff]  ;;  %v4555_v34 = vcombine.high %v676_v59, %v680_v50  ;;  %v4554_v18 = vcombine.low %v676_v59, %v680_v50 }
 0x26b   :  { %4051 = vmatprep.subr.bf16.mxu1 %v4501_v13  ;;  %v681_v11 = vld [vmem:[#allocation6 + $0x9f8] sm:$0xff]  ;;  %v4546_v13 = vcombine.low %v668_v62, %v672_v63 }
 0x26c   :  { %3879 = vmatmul.mubr.bf16.vlgmr.msra.gmra.mrb[12].mxu0 %v5065_v39  ;;  %v4556_v19 = vcombine.low %v677_v10, %v681_v11 }
 0x26d   :  { %4043 = vmatmul.mubr.bf16.vlgmr.msra.gmra.mrb[12].mxu1 %v5065_v39  ;;  %3888 = vmatpush1.bf16.msra.mxu0 %v4498_v2  ;;  %v4516_v39 = vcombine.low %v637_v21, %v641_v23  ;;  %v4557_v2 = vcombine.high %v677_v10, %v681_v11  ;;  %v692_v23 = vld [vmem:[#allocation6 + $0xa50] sm:$0xff] }
 0x26e   :  { %3919 = vmatprep.mubr.bf16.mxu0 %v5067_v48  ;;  %4052 = vmatpush1.bf16.msra.mxu1 %v4500_v16  ;;  %v685_v16 = vld [vmem:[#allocation6 + $0xa18] sm:$0xff]  ;;  %v732_v11 = vld [vmem:[#allocation6 + $0xb90] sm:$0xff] }
 0x26f   :  { %4083 = vmatprep.mubr.bf16.mxu1 %v5067_v48  ;;  %3889 = vmatprep.subr.bf16.mxu0 %v4507_v17  ;;  %v4522_v48 = vcombine.low %v644_v43, %v648_v28  ;;  %v689_v17 = vld [vmem:[#allocation6 + $0xa38] sm:$0xff] }
 0x270   :  { %4053 = vmatprep.subr.bf16.mxu1 %v4509_v20  ;;  %v4563_v20 = vcombine.high %v684_v15, %v688_v3  ;;  %v4565_v21 = vcombine.high %v685_v16, %v689_v17  ;;  %v4564_v43 = vcombine.low %v685_v16, %v689_v17  ;;  %v740_v17 = vld [vmem:[#allocation6 + $0xbd0] sm:$0xff] }
 0x271   :  { %3890 = vmatpush1.bf16.msra.mxu0 %v4506_v56  ;;  %v696_v56 = vld [vmem:[#allocation6 + $0xa70] sm:$0xff] }
 0x272   :  { %4054 = vmatpush1.bf16.msra.mxu1 %v4508_v25  ;;  %3891 = vmatprep.subr.bf16.mxu0 %v4515_v26  ;;  %v693_v25 = vld [vmem:[#allocation6 + $0xa58] sm:$0xff]  ;;  %v4571_v28 = vcombine.high %v692_v23, %v696_v56 }
 0x273   :  { %4055 = vmatprep.subr.bf16.mxu1 %v4517_v27  ;;  %v697_v26 = vld [vmem:[#allocation6 + $0xa78] sm:$0xff]  ;;  %v4562_v27 = vcombine.low %v684_v15, %v688_v3 }
 0x274   :  { %v4573_v30 = vcombine.high %v693_v25, %v697_v26  ;;  %v4572_v4 = vcombine.low %v693_v25, %v697_v26  ;;  %v748_v26 = vld [vmem:[#allocation6 + $0xc10] sm:$0xff] }
 0x275   :  { %3892 = vmatpush1.bf16.msra.mxu0 %v4514_v38  ;;  %v704_v38 = vld [vmem:[#allocation6 + $0xab0] sm:$0xff] }
 0x276   :  { %4056 = vmatpush1.bf16.msra.mxu1 %v4516_v39  ;;  %3893 = vmatprep.subr.bf16.mxu0 %v4523_v58  ;;  %v701_v39 = vld [vmem:[#allocation6 + $0xa98] sm:$0xff]  ;;  %v4579_v41 = vcombine.high %v700_v31, %v704_v38 }
 0x277   :  { %4057 = vmatprep.subr.bf16.mxu1 %v4525_v40  ;;  %v705_v58 = vld [vmem:[#allocation6 + $0xab8] sm:$0xff]  ;;  %v4570_v40 = vcombine.low %v692_v23, %v696_v56 }
 0x278   :  { %v4581_v32 = vcombine.high %v701_v39, %v705_v58  ;;  %v4580_v49 = vcombine.low %v701_v39, %v705_v58  ;;  %v756_v58 = vld [vmem:[#allocation6 + $0xc50] sm:$0xff] }
 0x279   :  { %3894 = vmatpush1.bf16.msra.mxu0 %v4522_v48  ;;  %v712_v48 = vld [vmem:[#allocation6 + $0xaf0] sm:$0xff] }
 0x27a   :  { %4058 = vmatpush1.bf16.msra.mxu1 %v4524_v44  ;;  %3895 = vmatprep.subr.bf16.mxu0 %v4531_v45  ;;  %v709_v44 = vld [vmem:[#allocation6 + $0xad8] sm:$0xff]  ;;  %v4587_v51 = vcombine.high %v708_v42, %v712_v48 }
 0x27b   :  { %4059 = vmatprep.subr.bf16.mxu1 %v4533_v46  ;;  %v713_v45 = vld [vmem:[#allocation6 + $0xaf8] sm:$0xff]  ;;  %v4578_v46 = vcombine.low %v700_v31, %v704_v38 }
 0x27c   :  { %v4589_v52 = vcombine.high %v709_v44, %v713_v45  ;;  %v4588_v62 = vcombine.low %v709_v44, %v713_v45  ;;  %v764_v44 = vld [vmem:[#allocation6 + $0xc90] sm:$0xff] }
 0x27d   :  { %3896 = vmatpush1.bf16.msra.mxu0 %v4530_v55  ;;  %v720_v55 = vld [vmem:[#allocation6 + $0xb30] sm:$0xff] }
 0x27e   :  { %4060 = vmatpush1.bf16.msra.mxu1 %v4532_v57  ;;  %3897 = vmatprep.subr.bf16.mxu0 %v4539_v60  ;;  %v717_v57 = vld [vmem:[#allocation6 + $0xb18] sm:$0xff]  ;;  %v4595_v63 = vcombine.high %v716_v54, %v720_v55  ;;  %v768_v45 = vld [vmem:[#allocation6 + $0xcb0] sm:$0xff] }
 0x27f   :  { %4061 = vmatprep.subr.bf16.mxu1 %v4541_v61  ;;  %v721_v60 = vld [vmem:[#allocation6 + $0xb38] sm:$0xff]  ;;  %v4586_v61 = vcombine.low %v708_v42, %v712_v48 }
 0x280   :  { %v4597_v0 = vcombine.high %v717_v57, %v721_v60  ;;  %v4596_v59 = vcombine.low %v717_v57, %v721_v60  ;;  %v772_v60 = vld [vmem:[#allocation6 + $0xcd0] sm:$0xff] }
 0x281   :  { %3898 = vmatpush1.bf16.msra.mxu0 %v4538_v6  ;;  %v728_v6 = vld [vmem:[#allocation6 + $0xb70] sm:$0xff] }
 0x282   :  { %4062 = vmatpush1.bf16.msra.mxu1 %v4540_v7  ;;  %3899 = vmatprep.subr.bf16.mxu0 %v4547_v8  ;;  %v725_v7 = vld [vmem:[#allocation6 + $0xb58] sm:$0xff]  ;;  %v4603_v50 = vcombine.high %v724_v5, %v728_v6 }
 0x283   :  { %4063 = vmatprep.subr.bf16.mxu1 %v4549_v9  ;;  %v729_v8 = vld [vmem:[#allocation6 + $0xb78] sm:$0xff]  ;;  %v4594_v9 = vcombine.low %v716_v54, %v720_v55  ;;  %v4643_v55 = vcombine.high %v764_v44, %v768_v45 }
 0x284   :  { %v4605_v10 = vcombine.high %v725_v7, %v729_v8  ;;  %v4604_v15 = vcombine.low %v725_v7, %v729_v8  ;;  %v780_v7 = vld [vmem:[#allocation6 + $0xd10] sm:$0xff] }
 0x285   :  { %3900 = vmatpush1.bf16.msra.mxu0 %v4546_v13  ;;  %v736_v13 = vld [vmem:[#allocation6 + $0xbb0] sm:$0xff] }
 0x286   :  { %4064 = vmatpush1.bf16.msra.mxu1 %v4548_v14  ;;  %3901 = vmatprep.subr.bf16.mxu0 %v4555_v34  ;;  %v733_v14 = vld [vmem:[#allocation6 + $0xb98] sm:$0xff]  ;;  %v4611_v3 = vcombine.high %v732_v11, %v736_v13  ;;  %v784_v8 = vld [vmem:[#allocation6 + $0xd30] sm:$0xff] }
 0x287   :  { %4065 = vmatprep.subr.bf16.mxu1 %v4557_v2  ;;  %v737_v34 = vld [vmem:[#allocation6 + $0xbb8] sm:$0xff]  ;;  %v4602_v2 = vcombine.low %v724_v5, %v728_v6 }
 0x288   :  { %v4613_v16 = vcombine.high %v733_v14, %v737_v34  ;;  %v4612_v23 = vcombine.low %v733_v14, %v737_v34  ;;  %v792_v14 = vld [vmem:[#allocation6 + $0xd70] sm:$0xff]  ;;  %v789_v34 = vld [vmem:[#allocation6 + $0xd58] sm:$0xff] }
 0x289   :  { %3902 = vmatpush1.bf16.msra.mxu0 %v4554_v18  ;;  %v744_v18 = vld [vmem:[#allocation6 + $0xbf0] sm:$0xff] }
 0x28a   :  { %4066 = vmatpush1.bf16.msra.mxu1 %v4556_v19  ;;  %3903 = vmatprep.subr.bf16.mxu0 %v4563_v20  ;;  %v741_v19 = vld [vmem:[#allocation6 + $0xbd8] sm:$0xff]  ;;  %v4619_v56 = vcombine.high %v740_v17, %v744_v18 }
 0x28b   :  { %4067 = vmatprep.subr.bf16.mxu1 %v4565_v21  ;;  %v745_v20 = vld [vmem:[#allocation6 + $0xbf8] sm:$0xff]  ;;  %v4610_v21 = vcombine.low %v732_v11, %v736_v13  ;;  %v788_v13 = vld [vmem:[#allocation6 + $0xd50] sm:$0xff] }
 0x28c   :  { %v4621_v25 = vcombine.high %v741_v19, %v745_v20  ;;  %v4620_v31 = vcombine.low %v741_v19, %v745_v20  ;;  %v796_v19 = vld [vmem:[#allocation6 + $0xd90] sm:$0xff] }
 0x28d   :  { %3904 = vmatpush1.bf16.msra.mxu0 %v4562_v27  ;;  %v752_v27 = vld [vmem:[#allocation6 + $0xc30] sm:$0xff] }
 0x28e   :  { %4068 = vmatpush1.bf16.msra.mxu1 %v4564_v43  ;;  %3905 = vmatprep.subr.bf16.mxu0 %v4571_v28  ;;  %v749_v43 = vld [vmem:[#allocation6 + $0xc18] sm:$0xff]  ;;  %v4627_v38 = vcombine.high %v748_v26, %v752_v27  ;;  %v800_v20 = vld [vmem:[#allocation6 + $0xdb0] sm:$0xff] }
 0x28f   :  { %4069 = vmatprep.subr.bf16.mxu1 %v4573_v30  ;;  %v753_v28 = vld [vmem:[#allocation6 + $0xc38] sm:$0xff]  ;;  %v4618_v30 = vcombine.low %v740_v17, %v744_v18  ;;  %v4667_v17 = vcombine.high %v788_v13, %v792_v14 }
 0x290   :  { %v4629_v39 = vcombine.high %v749_v43, %v753_v28  ;;  %v4628_v42 = vcombine.low %v749_v43, %v753_v28  ;;  %v4666_v28 = vcombine.low %v788_v13, %v792_v14 }
 0x291   :  { %3906 = vmatpush1.bf16.msra.mxu0 %v4570_v40  ;;  %v760_v40 = vld [vmem:[#allocation6 + $0xc70] sm:$0xff] }
 0x292   :  { %4070 = vmatpush1.bf16.msra.mxu1 %v4572_v4  ;;  %3907 = vmatprep.subr.bf16.mxu0 %v4579_v41  ;;  %v4626_v4 = vcombine.low %v748_v26, %v752_v27  ;;  %v757_v41 = vld [vmem:[#allocation6 + $0xc58] sm:$0xff]  ;;  %v4635_v48 = vcombine.high %v756_v58, %v760_v40 }
 0x293   :  { %4071 = vmatprep.subr.bf16.mxu1 %v4581_v32  ;;  %v761_v32 = vld [vmem:[#allocation6 + $0xc78] sm:$0xff] }
 0x294   :  { %v4636_v54 = vcombine.low %v757_v41, %v761_v32  ;;  %v5122_v26 = vld [vmem:[#allocation7 + $0x2] ss:$4 sm:$0xff] }
 0x295   :  { %3908 = vmatpush1.bf16.msra.mxu0 %v4578_v46  ;;  %v4637_v46 = vcombine.high %v757_v41, %v761_v32  ;;  %v4147_v32 = vrot.slane %v5122_v26, %v5015_v33 }
 0x296   :  { %4072 = vmatpush1.bf16.msra.mxu1 %v4580_v49  ;;  %3909 = vmatprep.subr.bf16.mxu0 %v4587_v51  ;;  %v765_v49 = vld [vmem:[#allocation6 + $0xc98] sm:$0xff] }
 0x297   :  { %4073 = vmatprep.subr.bf16.mxu1 %v4589_v52  ;;  %v769_v51 = vld [vmem:[#allocation6 + $0xcb8] sm:$0xff]  ;;  %v4634_v52 = vcombine.low %v756_v58, %v760_v40  ;;  %v804_v40 = vld [vmem:[#allocation6 + $0xdd0] sm:$0xff] }
 0x298   :  { %v4645_v57 = vcombine.high %v765_v49, %v769_v51 }
 0x299   :  { %3910 = vmatpush1.bf16.msra.mxu0 %v4586_v61  ;;  %v776_v61 = vld [vmem:[#allocation6 + $0xcf0] sm:$0xff] }
 0x29a   :  { %4074 = vmatpush1.bf16.msra.mxu1 %v4588_v62  ;;  %3911 = vmatprep.subr.bf16.mxu0 %v4595_v63  ;;  %v773_v62 = vld [vmem:[#allocation6 + $0xcd8] sm:$0xff]  ;;  %v4651_v5 = vcombine.high %v772_v60, %v776_v61 }
 0x29b   :  { %4075 = vmatprep.subr.bf16.mxu1 %v4597_v0  ;;  %v777_v63 = vld [vmem:[#allocation6 + $0xcf8] sm:$0xff]  ;;  %v4642_v0 = vcombine.low %v764_v44, %v768_v45 }
 0x29c   :  { %v4653_v6 = vcombine.high %v773_v62, %v777_v63  ;;  %v805_v45 = vld [vmem:[#allocation6 + $0xdd8] sm:$0xff] }
 0x29d   :  { %3912 = vmatpush1.bf16.msra.mxu0 %v4594_v9  ;;  %v781_v9 = vld [vmem:[#allocation6 + $0xd18] sm:$0xff] }
 0x29e   :  { %4076 = vmatpush1.bf16.msra.mxu1 %v4596_v59  ;;  %3913 = vmatprep.subr.bf16.mxu0 %v4603_v50  ;;  %v785_v59 = vld [vmem:[#allocation6 + $0xd38] sm:$0xff]  ;;  %v4652_v50 = vcombine.low %v773_v62, %v777_v63 }
 0x29f   :  { %4077 = vmatprep.subr.bf16.mxu1 %v4605_v10  ;;  %v4659_v10 = vcombine.high %v780_v7, %v784_v8  ;;  %v4661_v11 = vcombine.high %v781_v9, %v785_v59 }
 0x2a1   :  { %3914 = vmatpush1.bf16.msra.mxu0 %v4602_v2  ;;  %v793_v2 = vld [vmem:[#allocation6 + $0xd78] sm:$0xff] }
 0x2a2   :  { %4078 = vmatpush1.bf16.msra.mxu1 %v4604_v15  ;;  %3915 = vmatprep.subr.bf16.mxu0 %v4611_v3  ;;  %v4658_v15 = vcombine.low %v780_v7, %v784_v8  ;;  %v5116_v3 = vld [vmem:[#allocation7 + $0x1] ss:$4 sm:$0xff]  ;;  %v4669_v18 = vcombine.high %v789_v34, %v793_v2 }
 0x2a3   :  { %4079 = vmatprep.subr.bf16.mxu1 %v4613_v16  ;;  %v4660_v16 = vcombine.low %v781_v9, %v785_v59  ;;  %v884_v27 = vrot.slane %v5116_v3, %v5020_v35  ;;  %v892_v43 = vrot.slane %v5116_v3, %v5023_v36  ;;  %v816_v7 = vld [vmem:[#allocation6 + $0xe30] sm:$0xff]  ;;  %v813_v9 = vld [vmem:[#allocation6 + $0xe18] sm:$0xff] }
 0x2a4   :  { %v817_v59 = vld [vmem:[#allocation6 + $0xe38] sm:$0xff] }
 0x2a5   :  { %3916 = vmatpush1.bf16.msra.mxu0 %v4610_v21  ;;  %v880_v21 = vrot.slane %v5116_v3, %v5015_v33 }
 0x2a6   :  { %4080 = vmatpush1.bf16.msra.mxu1 %v4612_v23  ;;  %3917 = vmatprep.subr.bf16.mxu0 %v4619_v56  ;;  %v888_v23 = vrot.slane %v5116_v3, %v5054_v53  ;;  %v797_v56 = vld [vmem:[#allocation6 + $0xd98] sm:$0xff] }
 0x2a7   :  { %4081 = vmatprep.subr.bf16.mxu1 %v4621_v25  ;;  %v801_v25 = vld [vmem:[#allocation6 + $0xdb8] sm:$0xff] }
 0x2a8   :  { %v4677_v58 = vcombine.high %v797_v56, %v801_v25  ;;  %v4676_v33 = vcombine.low %v797_v56, %v801_v25 }
 0x2a9   :  { %3918 = vmatpush1.bf16.msra.mxu0 %v4618_v30  ;;  %v4668_v30 = vcombine.low %v789_v34, %v793_v2  ;;  %v4693_v2 = vcombine.high %v813_v9, %v817_v59 }
 0x2aa   :  { %4082 = vmatpush1.bf16.msra.mxu1 %v4620_v31  ;;  %3928 = vmatprep.subr.bf16.mxu0 %v4627_v38  ;;  %v4675_v31 = vcombine.high %v796_v19, %v800_v20 }
 0x2ab   :  { %4092 = vmatprep.subr.bf16.mxu1 %v4629_v39 }
 0x2ac   :  { %3920 = vmatmul.mubr.bf16.vlgmr.msra.gmra.mrb[12].mxu0 %v5085_v22 }
 0x2ad   :  { %4084 = vmatmul.mubr.bf16.vlgmr.msra.gmra.mrb[12].mxu1 %v5085_v22  ;;  %3929 = vmatpush1.bf16.msra.mxu0 %v4626_v4  ;;  %v4644_v22 = vcombine.low %v765_v49, %v769_v51  ;;  %v808_v4 = vld [vmem:[#allocation6 + $0xdf0] sm:$0xff]  ;;  %v4151_v51 = vrot.slane %v5122_v26, %v5020_v35 }
 0x2ae   :  { %3960 = vmatprep.mubr.bf16.mxu0 %v5087_v29  ;;  %4093 = vmatpush1.bf16.msra.mxu1 %v4628_v42  ;;  %v4683_v63 = vcombine.high %v804_v40, %v808_v4  ;;  %v812_v35 = vld [vmem:[#allocation6 + $0xe10] sm:$0xff] }
 0x2af   :  { %4124 = vmatprep.mubr.bf16.mxu1 %v5087_v29  ;;  %3930 = vmatprep.subr.bf16.mxu0 %v4635_v48  ;;  %v4650_v29 = vcombine.low %v772_v60, %v776_v61  ;;  %v4691_v14 = vcombine.high %v812_v35, %v816_v7 }
 0x2b0   :  { %4094 = vmatprep.subr.bf16.mxu1 %v4637_v46  ;;  %v809_v46 = vld [vmem:[#allocation6 + $0xdf8] sm:$0xff] }
 0x2b1   :  { %3931 = vmatpush1.bf16.msra.mxu0 %v4634_v52  ;;  %v4684_v13 = vcombine.low %v805_v45, %v809_v46 }
 0x2b2   :  { %4095 = vmatpush1.bf16.msra.mxu1 %v4636_v54  ;;  %3932 = vmatprep.subr.bf16.mxu0 %v4643_v55 }
 0x2b3   :  { %4096 = vmatprep.subr.bf16.mxu1 %v4645_v57  ;;  %v4674_v57 = vcombine.low %v796_v19, %v800_v20 }
 0x2b5   :  { %3933 = vmatpush1.bf16.msra.mxu0 %v4642_v0 }
 0x2b6   :  { %4097 = vmatpush1.bf16.msra.mxu1 %v4644_v22  ;;  %3934 = vmatprep.subr.bf16.mxu0 %v4651_v5  ;;  %v4155_v22 = vrot.slane %v5122_v26, %v5054_v53 }
 0x2b7   :  { %4098 = vmatprep.subr.bf16.mxu1 %v4653_v6  ;;  %v4685_v6 = vcombine.high %v805_v45, %v809_v46  ;;  %v844_v46 = vld [vmem:[#allocation6 + $0xf10] sm:$0xff] }
 0x2b9   :  { %3935 = vmatpush1.bf16.msra.mxu0 %v4650_v29 }
 0x2ba   :  { %4099 = vmatpush1.bf16.msra.mxu1 %v4652_v50  ;;  %3936 = vmatprep.subr.bf16.mxu0 %v4659_v10  ;;  %v4159_v10 = vrot.slane %v5122_v26, %v5023_v36  ;;  %v4692_v36 = vcombine.low %v813_v9, %v817_v59  ;;  %v865_v9 = vld [vmem:[#allocation6 + $0xfb8] sm:$0xff] }
 0x2bb   :  { %4100 = vmatprep.subr.bf16.mxu1 %v4661_v11  ;;  %v4682_v11 = vcombine.low %v804_v40, %v808_v4  ;;  %v836_v40 = vld [vmem:[#allocation6 + $0xed0] sm:$0xff] }
 0x2bc   :  { %v840_v4 = vld [vmem:[#allocation6 + $0xef0] sm:$0xff] }
 0x2bd   :  { %3937 = vmatpush1.bf16.msra.mxu0 %v4658_v15  ;;  %v820_v15 = vld [vmem:[#allocation6 + $0xe50] sm:$0xff] }
 0x2be   :  { %4101 = vmatpush1.bf16.msra.mxu1 %v4660_v16  ;;  %3938 = vmatprep.subr.bf16.mxu0 %v4667_v17  ;;  %v824_v16 = vld [vmem:[#allocation6 + $0xe70] sm:$0xff]  ;;  %v821_v17 = vld [vmem:[#allocation6 + $0xe58] sm:$0xff] }
 0x2bf   :  { %v3634_v38 = vpop.f32.mrb[8].mxu0  ;;  %v3798_v39 = vpop.f32.mrb[8].mxu1  ;;  %4102 = vmatprep.subr.bf16.mxu1 %v4669_v18  ;;  %v825_v18 = vld [vmem:[#allocation6 + $0xe78] sm:$0xff] }
 0x2c0   :  { %v4752_v41 = vadd.f32 %v3634_v38, %v880_v21  ;;  %v4754_v42 = vadd.f32 %v3798_v39, %v888_v23  ;;  %v3636_v48 = vpop.f32.mrb[9].mxu0  ;;  %v3800_v44 = vpop.f32.mrb[9].mxu1  ;;  %v4690_v21 = vcombine.low %v812_v35, %v816_v7  ;;  %v4699_v23 = vcombine.high %v820_v15, %v824_v16  ;;  %v860_v35 = vld [vmem:[#allocation6 + $0xf90] sm:$0xff] }
 0x2c1   :  { %v4753_v49 = vadd.f32 %v3636_v48, %v884_v27  ;;  %v4755_v52 = vadd.f32 %v3800_v44, %v892_v43  ;;  %v3638_v54 = vpop.f32.mrb[10].mxu0  ;;  %v3802_v55 = vpop.f32.mrb[10].mxu1  ;;  %3939 = vmatpush1.bf16.msra.mxu0 %v4666_v28  ;;  %v4701_v25 = vcombine.high %v821_v17, %v825_v18  ;;  %v828_v27 = vld [vmem:[#allocation6 + $0xe90] sm:$0xff]  ;;  %v829_v28 = vld [vmem:[#allocation6 + $0xe98] sm:$0xff]  ;;  %v4700_v38 = vcombine.low %v821_v17, %v825_v18 }
 0x2c2   :  { %v4133_v60 = vmax.f32 %v4752_v41, 0.0  ;;  %4103 = vmatpush1.bf16.msra.mxu1 %v4668_v30  ;;  %v3639_v61 = vpop.f32.mrb[11].mxu0  ;;  %v3803_v62 = vpop.f32.mrb[11].mxu1  ;;  %3940 = vmatprep.subr.bf16.mxu0 %v4675_v31  ;;  %v4135_v0 = vmax.f32 %v4754_v42, 0.0  ;;  %v832_v43 = vld [vmem:[#allocation6 + $0xeb0] sm:$0xff]  ;;  %v833_v30 = vld [vmem:[#allocation6 + $0xeb8] sm:$0xff]  ;;  %v4698_v31 = vcombine.low %v820_v15, %v824_v16  ;;  %v4715_v44 = vcombine.high %v836_v40, %v840_v4 }
 0x2c3   :  { %v4134_v5 = vmax.f32 %v4753_v49, 0.0  ;;  %4104 = vmatprep.subr.bf16.mxu1 %v4677_v58  ;;  %v4136_v50 = vmax.f32 %v4755_v52, 0.0  ;;  %v4707_v39 = vcombine.high %v828_v27, %v832_v43  ;;  %v4709_v58 = vcombine.high %v829_v28, %v833_v30  ;;  %v837_v41 = vld [vmem:[#allocation6 + $0xed8] sm:$0xff]  ;;  %v848_v49 = vld [vmem:[#allocation6 + $0xf30] sm:$0xff] }
 0x2c4   :  { %v4184_v8 = vmul.f32 %v4147_v32, %v4133_v60  ;;  %v4186_v53 = vmul.f32 %v4155_v22, %v4135_v0  ;;  %v841_v32 = vld [vmem:[#allocation6 + $0xef8] sm:$0xff]  ;;  %v4706_v42 = vcombine.low %v828_v27, %v832_v43  ;;  %v4708_v48 = vcombine.low %v829_v28, %v833_v30  ;;  %v852_v61 = vld [vmem:[#allocation6 + $0xf50] sm:$0xff] }
 0x2c5   :  { %v4185_v29 = vmul.f32 %v4151_v51, %v4134_v5  ;;  %3941 = vmatpush1.bf16.msra.mxu0 %v4674_v57  ;;  %v4187_v19 = vmul.f32 %v4159_v10, %v4136_v50  ;;  %v4717_v45 = vcombine.high %v837_v41, %v841_v32  ;;  %v845_v51 = vld [vmem:[#allocation6 + $0xf18] sm:$0xff]  ;;  %v4714_v54 = vcombine.low %v836_v40, %v840_v4  ;;  %v856_v62 = vld [vmem:[#allocation6 + $0xf70] sm:$0xff] }
 0x2c6   :  { %4105 = vmatpush1.bf16.msra.mxu1 %v4676_v33  ;;  %3942 = vmatprep.subr.bf16.mxu0 %v4683_v63  ;;  %v849_v52 = vld [vmem:[#allocation6 + $0xf38] sm:$0xff]  ;;  %v4716_v55 = vcombine.low %v837_v41, %v841_v32  ;;  %v4723_v57 = vcombine.high %v844_v46, %v848_v49  ;;  %v4722_v0 = vcombine.low %v844_v46, %v848_v49  ;;  %v864_v7 = vld [vmem:[#allocation6 + $0xfb0] sm:$0xff] }
 0x2c7   :  { %v4192_v34 = vadd.f32 %v4185_v29, %v4184_v8  ;;  %4106 = vmatprep.subr.bf16.mxu1 %v4685_v6  ;;  %v4725_v60 = vcombine.high %v845_v51, %v849_v52  ;;  %v853_v33 = vld [vmem:[#allocation6 + $0xf58] sm:$0xff]  ;;  %v4724_v22 = vcombine.low %v845_v51, %v849_v52  ;;  %v4731_v5 = vcombine.high %v852_v61, %v856_v62 }
 0x2c8   :  { %v857_v63 = vld [vmem:[#allocation6 + $0xf78] sm:$0xff]  ;;  %v4730_v59 = vcombine.low %v852_v61, %v856_v62  ;;  %v4739_v50 = vcombine.high %v860_v35, %v864_v7  ;;  %v4163_v27 = vrot.slane %v5122_v26, %v5074_v37 }
 0x2c9   :  { %v4193_v20 = vadd.f32 %v4192_v34, %v4186_v53  ;;  %3943 = vmatpush1.bf16.msra.mxu0 %v4682_v11  ;;  %v4733_v6 = vcombine.high %v853_v33, %v857_v63  ;;  %v861_v8 = vld [vmem:[#allocation6 + $0xf98] sm:$0xff]  ;;  %v4732_v29 = vcombine.low %v853_v33, %v857_v63  ;;  %v868_v11 = vld [vmem:[#allocation6 + $0xfd0] sm:$0xff]  ;;  %v4738_v34 = vcombine.low %v860_v35, %v864_v7 }
 0x2ca   :  { %4107 = vmatpush1.bf16.msra.mxu1 %v4684_v13  ;;  %3944 = vmatprep.subr.bf16.mxu0 %v4691_v14  ;;  %v4741_v10 = vcombine.high %v861_v8, %v865_v9  ;;  %v872_v13 = vld [vmem:[#allocation6 + $0xff0] sm:$0xff]  ;;  %v869_v14 = vld [vmem:[#allocation6 + $0xfd8] sm:$0xff] }
 0x2cb   :  { %v5136_v56 = vadd.f32 %v4193_v20, %v4187_v19  ;;  %4108 = vmatprep.subr.bf16.mxu1 %v4693_v2  ;;  %v873_v53 = vld [vmem:[#allocation6 + $0xff8] sm:$0xff]  ;;  %v4740_v2 = vcombine.low %v861_v8, %v865_v9  ;;  %v4747_v15 = vcombine.high %v868_v11, %v872_v13  ;;  %v4746_v17 = vcombine.low %v868_v11, %v872_v13 }
 0x2cc   :  { %v4749_v16 = vcombine.high %v869_v14, %v873_v53  ;;  %v4748_v18 = vcombine.low %v869_v14, %v873_v53  ;;  %v896_v19 = vrot.slane %v5116_v3, %v5074_v37  ;;  %v904_v20 = vrot.slane %v5116_v3, %v5094_v24 }
 0x2cd   :  { %3945 = vmatpush1.bf16.msra.mxu0 %v4690_v21  ;;  %v900_v21 = vrot.slane %v5116_v3, %v5057_v1  ;;  %v4171_v37 = vrot.slane %v5122_v26, %v5094_v24 }
 0x2ce   :  { %4109 = vmatpush1.bf16.msra.mxu1 %v4692_v36  ;;  %3946 = vmatprep.subr.bf16.mxu0 %v4699_v23  ;;  %v908_v36 = vrot.slane %v5116_v3, %v5077_v47 }
 0x2cf   :  { %4110 = vmatprep.subr.bf16.mxu1 %v4701_v25 }
 0x2d1   :  { %3947 = vmatpush1.bf16.msra.mxu0 %v4698_v31  ;;  %v4167_v31 = vrot.slane %v5122_v26, %v5057_v1  ;;  %v4175_v1 = vrot.slane %v5122_v26, %v5077_v47 }
 0x2d2   :  { %4111 = vmatpush1.bf16.msra.mxu1 %v4700_v38  ;;  %3948 = vmatprep.subr.bf16.mxu0 %v4707_v39 }
 0x2d3   :  { %4112 = vmatprep.subr.bf16.mxu1 %v4709_v58 }
 0x2d5   :  { %3949 = vmatpush1.bf16.msra.mxu0 %v4706_v42 }
 0x2d6   :  { %4113 = vmatpush1.bf16.msra.mxu1 %v4708_v48  ;;  %3950 = vmatprep.subr.bf16.mxu0 %v4715_v44 }
 0x2d7   :  { %4114 = vmatprep.subr.bf16.mxu1 %v4717_v45 }
 0x2d9   :  { %3951 = vmatpush1.bf16.msra.mxu0 %v4714_v54 }
 0x2da   :  { %4115 = vmatpush1.bf16.msra.mxu1 %v4716_v55  ;;  %3952 = vmatprep.subr.bf16.mxu0 %v4723_v57  ;;  %v4750_v57 = vld [vmem:[#allocation7 + $0x3] ss:$0 sm:$0xff] }
 0x2db   :  { %4116 = vmatprep.subr.bf16.mxu1 %v4725_v60 }
 0x2dd   :  { %3953 = vmatpush1.bf16.msra.mxu0 %v4722_v0 }
 0x2de   :  { %4117 = vmatpush1.bf16.msra.mxu1 %v4724_v22  ;;  %3954 = vmatprep.subr.bf16.mxu0 %v4731_v5 }
 0x2df   :  { %4118 = vmatprep.subr.bf16.mxu1 %v4733_v6 }
 0x2e1   :  { %3955 = vmatpush1.bf16.msra.mxu0 %v4730_v59 }
 0x2e2   :  { %4119 = vmatpush1.bf16.msra.mxu1 %v4732_v29  ;;  %3956 = vmatprep.subr.bf16.mxu0 %v4739_v50 }
 0x2e3   :  { %4120 = vmatprep.subr.bf16.mxu1 %v4741_v10 }
 0x2e5   :  { %3957 = vmatpush1.bf16.msra.mxu0 %v4738_v34 }
 0x2e6   :  { %4121 = vmatpush1.bf16.msra.mxu1 %v4740_v2  ;;  %3958 = vmatprep.subr.bf16.mxu0 %v4747_v15 }
 0x2e7   :  { %4122 = vmatprep.subr.bf16.mxu1 %v4749_v16 }
 0x2e9   :  { %3959 = vmatpush1.bf16.msra.mxu0 %v4746_v17 }
 0x2ea   :  { %4123 = vmatpush1.bf16.msra.mxu1 %v4748_v18 }
 0x2ec   :  { %3961 = vmatmul.mubr.bf16.vlgmr.msra.gmra.mrb[12].mxu0 %v5098_v12 }
 0x2ed   :  { %4125 = vmatmul.mubr.bf16.vlgmr.msra.gmra.mrb[12].mxu1 %v5098_v12 }
 0x3bf   :  { %v3962_v23 = vpop.f32.mrb[12].mxu0 }
 0x3c0   :  { %v4756_v25 = vadd.f32 %v3962_v23, %v896_v19  ;;  %v4126_v43 = vpop.f32.mrb[12].mxu1  ;;  %v3964_v28 = vpop.f32.mrb[13].mxu0 }
 0x3c1   :  { %v4758_v12 = vadd.f32 %v4126_v43, %v904_v20  ;;  %v4757_v30 = vadd.f32 %v3964_v28, %v900_v21  ;;  %v4128_v38 = vpop.f32.mrb[13].mxu1  ;;  %v3966_v39 = vpop.f32.mrb[14].mxu0 }
 0x3c2   :  { %v4137_v58 = vmax.f32 %v4756_v25, 0.0  ;;  %v4759_v40 = vadd.f32 %v4128_v38, %v908_v36  ;;  %v4130_v4 = vpop.f32.mrb[14].mxu1  ;;  %v3967_v41 = vpop.f32.mrb[15].mxu0 }
 0x3c3   :  { %v4138_v32 = vmax.f32 %v4757_v30, 0.0  ;;  %v4131_v3 = vpop.f32.mrb[15].mxu1  ;;  %v4139_v48 = vmax.f32 %v4758_v12, 0.0 }
 0x3c4   :  { %v4188_v42 = vmul.f32 %v4163_v27, %v4137_v58  ;;  %v4140_v46 = vmax.f32 %v4759_v40, 0.0 }
 0x3c5   :  { %v4189_v44 = vmul.f32 %v4167_v31, %v4138_v32  ;;  %v4190_v49 = vmul.f32 %v4171_v37, %v4139_v48 }
 0x3c6   :  { %v4195_v45 = vadd.f32 %v5136_v56, %v4188_v42  ;;  %v4191_v52 = vmul.f32 %v4175_v1, %v4140_v46 }
 0x3c8   :  { %v4196_v51 = vadd.f32 %v4195_v45, %v4189_v44 }
 0x3ca   :  { %v4197_v54 = vadd.f32 %v4196_v51, %v4190_v49 }
 0x3cc   :  { %v4198_v55 = vadd.f32 %v4197_v54, %v4191_v52 }
 0x3ce   :  { %4199 = vadd.xlane.f32.xlu0 %v4198_v55 }
 0x45b   :  { %v4200_v60 = vpop.xlane.xlu0 %4199 }
 0x45c   :  { %v4206_v61 = vadd.f32 %v4750_v57, %v4200_v60 }
 0x45e   :  { %v4751_v62 = vmul.f32 -1.442695, %v4206_v61 }
 0x460   :  { %4815 = vpow2.f32 %v4751_v62 }
 0x46a   :  { %v4816_v33 = vpop.eup %4815 }
 0x46b   :  { %v4210_v24 = vadd.f32 1.0, %v4816_v33 }
 0x46d   :  { %4817 = vrcp.f32 %v4210_v24 }
 0x477   :  { %v4818_v56 = vpop.eup %4817 }
 0x478   :  { %4214 = vst.msk [vmem:[%s5164_s4] sm:$0xff] %vm4213_vm2, %v4818_v56 }
 0x479   :  { %4219 = vsyncpa [#allocation3], 1 }
 0x47a   :  { %4220 = vsyncpa [#allocation5], 1 }
 0x47b   :  { %4221 = vsyncpa [#allocation8], 1 }

</bundles_post_ra>
